<compile_context>
chip_gen: v7x
topology: tpu7x:2x2x1
jax: 0.10.0
libtpu: 0.0.40
codegen_flags: <defaults>
</compile_context>

<pallas_src>
import functools

import jax
import jax.numpy as jnp
from jax.experimental import pallas as pl
from jax.experimental.pallas import tpu as pltpu


def _round_up(x, m):
  return ((x + m - 1) // m) * m


EPS = 1e-3  # BatchNorm2d eps used by the module.


# -----------------------------------------------------------------------------
# Fused kernel
# -----------------------------------------------------------------------------
def embedder_kernel(msg_ref, img_ref, *rest, W, block_count, apply_tanh):
  """Whole WatermarkEmbedder forward for one image.

  msg_ref   : (1, bit, 1)      message bits (channel-in-sublane)
  img_ref   : (1, 3, HW)       input image, flattened spatial in lanes
  rest      : [w_0, b_0, ..., w_{bc-1}, b_{bc-1},   conv blocks (Cout,9*Cin),(Cout,1)
               w_int, b_int,                         intermediate conv (C,9*R_TOT)
               w_out, b_out,                         1x1 conv (3,C),(3,1)
               o_ref,                                (1, 3, HW) output
               act_ref,                              (R_TOT, HWP) activation scratch
               stack_ref]                            (9*R_TOT, HW) stacked windows
  """
  act_ref, stack_ref = rest[-2], rest[-1]
  o_ref = rest[-3]
  wrefs = rest[:-3]
  conv_refs = wrefs[:2 * block_count]
  wi_ref, bi_ref, wo_ref, bo_ref = wrefs[2 * block_count:]

  C = wi_ref.shape[0]                 # channel_count
  bit = msg_ref.shape[1]              # bit_count
  HW = img_ref.shape[2]
  R_TOT, HWP = act_ref.shape
  PADL = (HWP - HW) // 2              # 128-aligned lane halo (>= W+1)
  ROW_MSG = C                         # dense row packing: [enc | msg | img]
  ROW_IMG = C + bit

  f32 = jnp.float32

  # dx zero-padding masks, generated in-kernel (no mask operand / DMA).
  # dy zero padding is supplied for free by the zeroed lane halo.
  col = jax.lax.broadcasted_iota(jnp.int32, (1, HW), 1) % W
  mask_l = (col > 0).astype(f32)        # dx = -1 invalid at x == 0
  mask_r = (col < W - 1).astype(f32)    # dx = +1 invalid at x == W-1

  def conv3x3(row0, nrows, w, b):
    """3x3 conv (zero padding) + bias as ONE MXU matmul.

    The 9 shifted, dx-masked windows are stacked into `stack_ref`, so the whole
    layer is a single (Cout, 9*nrows) @ (9*nrows, HW) contraction: accumulation
    stays on the MXU result path and the contraction K is 9x larger.
    """
    t = 0
    for dy in (-1, 0, 1):
      for dx in (-1, 0, 1):
        start = PADL + dy * W + dx                           # static lane offset
        win = act_ref[row0:row0 + nrows, start:start + HW]   # (nrows, HW)
        if dx == -1:
          win = win * mask_l          # mask the RHS window, not the contribution
        elif dx == 1:
          win = win * mask_r
        stack_ref[t * nrows:(t + 1) * nrows, :] = win
        t += 1
    return jnp.dot(w, stack_ref[0:9 * nrows, :],
                   preferred_element_type=f32) + b

  def gelu(y):
    # tanh-approximate GELU: runs on the (otherwise idle) EUP instead of a long
    # VALU erf polynomial.  See module TODO re: torch.nn.GELU() exact default.
    c = 0.7978845608028654  # sqrt(2/pi)
    return 0.5 * y * (1.0 + jnp.tanh(c * (y + 0.044715 * y * y * y)))

  # --- stage this image's inputs ---------------------------------------------
  # Only the lane halos are zeroed (interiors are always overwritten; dense row
  # packing leaves no gap rows) -- no full-buffer clear per grid step.
  act_ref[:, 0:PADL] = jnp.zeros((R_TOT, PADL), f32)
  act_ref[:, PADL + HW:HWP] = jnp.zeros((R_TOT, PADL), f32)
  # Message plane broadcast to INTERIOR lanes only; the zero halo then provides
  # correct zero padding for the message plane at the dy borders.
  act_ref[ROW_MSG:ROW_MSG + bit, PADL:PADL + HW] = jnp.broadcast_to(
      msg_ref[0], (bit, HW))
  act_ref[ROW_IMG:ROW_IMG + 3, PADL:PADL + HW] = img_ref[0]

  # --- conv blocks: 3 -> C, then (block_count - 1) x (C -> C) -----------------
  row0, nrows = ROW_IMG, 3
  for li in range(block_count):
    w = conv_refs[2 * li][...]
    b = conv_refs[2 * li + 1][...]
    y = gelu(conv3x3(row0, nrows, w, b))                # (C, HW)
    act_ref[0:C, PADL:PADL + HW] = y                    # encoded section
    row0, nrows = 0, C

  # --- intermediate conv over cat([messages, encoded, images]) ---------------
  # The buffer rows already hold all three parts (free concat); the stacked
  # weight was permuted on the host to the buffer row order [enc, msg, img].
  h = gelu(conv3x3(0, R_TOT, wi_ref[...], bi_ref[...]))  # (C, HW)

  # --- 1x1 output conv (+ optional tanh) --------------------------------------
  out = jnp.dot(wo_ref[...], h, preferred_element_type=f32) + bo_ref[...]
  if apply_tanh:
    out = jnp.tanh(out)
  o_ref[0] = out.astype(o_ref.dtype)


# -----------------------------------------------------------------------------
# Host-side parameter folding / layout plumbing
# -----------------------------------------------------------------------------
def _fold_conv_bn_taps(layer):
  """Fold eval-mode BN into the conv; returns (9, Cout, Cin) taps, (Cout,1) bias."""
  w = layer["w"]                                          # OIHW (torch layout)
  cout, cin = w.shape[0], w.shape[1]
  scale = layer["gamma"] / jnp.sqrt(layer["var"] + EPS)   # (cout,)
  w_taps = jnp.transpose(w, (2, 3, 0, 1)).reshape(9, cout, cin)
  w_taps = w_taps * scale[None, :, None]
  bias = ((layer["b"] - layer["mean"]) * scale + layer["beta"]).reshape(cout, 1)
  return w_taps, bias


def _stack_taps(w_taps):
  """(9, Cout, Cin) -> (Cout, 9*Cin), matching the in-kernel window stacking."""
  nine, cout, cin = w_taps.shape
  return jnp.transpose(w_taps, (1, 0, 2)).reshape(cout, nine * cin)


def _permute_inter_taps(w_taps, bit, C):
  """Reorder torch cat order [msg, enc, img] to buffer row order [enc, msg, img]."""
  return jnp.concatenate(
      [w_taps[:, :, bit:bit + C], w_taps[:, :, 0:bit], w_taps[:, :, bit + C:]],
      axis=2)


def _bcast_spec(a):
  nd = a.ndim
  return pl.BlockSpec(a.shape, lambda n, _nd=nd: (0,) * _nd)


# -----------------------------------------------------------------------------
# Public wrapper: full forward in ONE pallas_call
# -----------------------------------------------------------------------------
def watermark_embedder_pallas(images, messages, params, *, apply_tanh=True):
  """images: (N, 3, H, W) NCHW; messages: (N, bit).  Returns (N, 3, H, W)."""
  N, Cimg, H, W = images.shape
  C = params["blocks"][0]["w"].shape[0]
  bit = messages.shape[1]
  HW = H * W
  PADL = _round_up(W + 1, 128)     # 128-aligned lane halo
  HWP = HW + 2 * PADL
  R_TOT = C + bit + 3              # dense rows: [encoded | message | image]
  block_count = len(params["blocks"])

  # Fold BN into the conv weights and stack the 9 taps (host-side constant
  # folding -> the kernel does one (Cout, 9*Cin) matmul per layer).
  operands = []
  for lyr in params["blocks"]:
    w_taps, b = _fold_conv_bn_taps(lyr)
    operands += [_stack_taps(w_taps), b]
  wi_taps, bi = _fold_conv_bn_taps(params["inter"])
  wi = _stack_taps(_permute_inter_taps(wi_taps, bit, C))
  wo = params["w_out"].reshape(3, C)
  bo = params["b_out"].reshape(3, 1)
  operands += [wi, bi, wo, bo]

  # Channel-in-sublane, flattened-spatial-in-lane layouts (NCHW: reshape only).
  img_flat = images.reshape(N, Cimg, HW).astype(jnp.float32)
  msg3 = messages.astype(jnp.float32).reshape(N, bit, 1)
  operands = [msg3, img_flat] + operands

  in_specs = [
      pl.BlockSpec((1, bit, 1), lambda n: (n, 0, 0)),
      pl.BlockSpec((1, Cimg, HW), lambda n: (n, 0, 0)),
  ] + [_bcast_spec(a) for a in operands[2:]]

  kernel = functools.partial(
      embedder_kernel, W=W, block_count=block_count, apply_tanh=apply_tanh)

  # Explicit VMEM budget: scratch is (R_TOT,HWP) + (9*R_TOT,HW) f32 plus the
  # double-buffered (1,3,HW) I/O blocks and weights -- tiny at this size, but
  # keep the limit explicit so production sizes fail loudly (v7x: 64 MiB VMEM).
  vmem_limit = 32 * 1024 * 1024

  out = pl.pallas_call(
      kernel,
      out_shape=jax.ShapeDtypeStruct((N, Cimg, HW), jnp.float32),
      grid_spec=pltpu.PrefetchScalarGridSpec(
          num_scalar_prefetch=0,
          grid=(N,),
          in_specs=in_specs,
          out_specs=pl.BlockSpec((1, Cimg, HW), lambda n: (n, 0, 0)),
          scratch_shapes=[
              pltpu.VMEM((R_TOT, HWP), jnp.float32),      # halo-padded acts
              pltpu.VMEM((9 * R_TOT, HW), jnp.float32),   # stacked conv windows
          ],
      ),
      compiler_params=pltpu.CompilerParams(
          dimension_semantics=("parallel",),
          vmem_limit_bytes=vmem_limit),
  )(*operands)
  return out.reshape(N, Cimg, H, W)


# -----------------------------------------------------------------------------
# Synthetic parameters (deterministic) and a pure-JAX reference
# -----------------------------------------------------------------------------
def make_params(key, block_count, bit_count, channel_count):
  def conv_bn(k, cin, cout):
    ks = jax.random.split(k, 6)
    return dict(
        w=0.1 * jax.random.normal(ks[0], (cout, cin, 3, 3), jnp.float32),
        b=0.05 * jax.random.normal(ks[1], (cout,), jnp.float32),
        gamma=1.0 + 0.1 * jax.random.normal(ks[2], (cout,), jnp.float32),
        beta=0.05 * jax.random.normal(ks[3], (cout,), jnp.float32),
        mean=0.05 * jax.random.normal(ks[4], (cout,), jnp.float32),
        var=1.0 + 0.1 * jax.random.uniform(ks[5], (cout,), jnp.float32),
    )

  keys = jax.random.split(key, block_count + 2)
  blocks = [conv_bn(keys[0], 3, channel_count)]
  for i in range(1, block_count):
    blocks.append(conv_bn(keys[i], channel_count, channel_count))
  inter = conv_bn(keys[block_count], channel_count + 3 + bit_count,
                  channel_count)
  k1, k2 = jax.random.split(keys[block_count + 1])
  w_out = 0.1 * jax.random.normal(k1, (3, channel_count, 1, 1), jnp.float32)
  b_out = 0.05 * jax.random.normal(k2, (3,), jnp.float32)
  return dict(blocks=blocks, inter=inter, w_out=w_out, b_out=b_out)


def _conv_bn_gelu_ref(x, lyr):
  y = jax.lax.conv_general_dilated(
      x, lyr["w"], window_strides=(1, 1), padding="SAME",
      dimension_numbers=("NCHW", "OIHW", "NCHW"),
      precision=jax.lax.Precision.HIGHEST)
  y = y + lyr["b"][None, :, None, None]
  scale = lyr["gamma"] / jnp.sqrt(lyr["var"] + EPS)
  y = (y - lyr["mean"][None, :, None, None]) * scale[None, :, None, None] \
      + lyr["beta"][None, :, None, None]
  return jax.nn.gelu(y, approximate=False)   # exact erf (torch default)


def watermark_embedder_ref(images, messages, params, *, apply_tanh=True):
  N, _, H, W = images.shape
  x = images
  for lyr in params["blocks"]:
    x = _conv_bn_gelu_ref(x, lyr)
  msg_plane = jnp.broadcast_to(messages[:, :, None, None],
                               (N, messages.shape[1], H, W))
  cat = jnp.concatenate([msg_plane, x, images], axis=1)
  h = _conv_bn_gelu_ref(cat, params["inter"])
  out = jax.lax.conv_general_dilated(
      h, params["w_out"], window_strides=(1, 1), padding="VALID",
      dimension_numbers=("NCHW", "OIHW", "NCHW"),
      precision=jax.lax.Precision.HIGHEST)
  out = out + params["b_out"][None, :, None, None]
  if apply_tanh:
    out = jnp.tanh(out)
  return out


# -----------------------------------------------------------------------------
if __name__ == "__main__":
  block_count = 2
  bit_count = 4
  channel_count = 8
  N, H, W = 2, 16, 16

  key = jax.random.PRNGKey(0)
  key, kx, km = jax.random.split(key, 3)
  images = jax.random.normal(kx, (N, 3, H, W), jnp.float32)   # NCHW like torch
  messages = jax.random.bernoulli(km, 0.5, (N, bit_count)).astype(jnp.float32)

  params = make_params(key, block_count, bit_count, channel_count)

  out = jax.block_until_ready(watermark_embedder_pallas(images, messages, params))
  ref = jax.block_until_ready(watermark_embedder_ref(images, messages, params))

  assert out.shape == (N, 3, H, W), out.shape
  max_diff = float(jnp.max(jnp.abs(out - ref)))
  # Explicit tolerance choice: covers (a) the tanh-GELU approximation vs the
  # exact-erf reference (<~5e-4 at the output) and (b) possible bf16 MXU passes
  # at default in-kernel matmul precision vs the Precision.HIGHEST reference.
  assert max_diff < 5e-3, "mismatch vs reference, max |diff| = %g" % max_diff

  print("KERNEL_OK")
</pallas_src>

<mosaic_0001>
module attributes {stable_mosaic.version = 11 : i64} {
  func.func @embedder_kernel(%arg0: i32, %arg1: memref<1x4x1xf32, #tpu.memory_space<vmem>>, %arg2: memref<1x3x256xf32, #tpu.memory_space<vmem>>, %arg3: memref<8x27xf32, #tpu.memory_space<vmem>>, %arg4: memref<8x1xf32, #tpu.memory_space<vmem>>, %arg5: memref<8x72xf32, #tpu.memory_space<vmem>>, %arg6: memref<8x1xf32, #tpu.memory_space<vmem>>, %arg7: memref<8x135xf32, #tpu.memory_space<vmem>>, %arg8: memref<8x1xf32, #tpu.memory_space<vmem>>, %arg9: memref<3x8xf32, #tpu.memory_space<vmem>>, %arg10: memref<3x1xf32, #tpu.memory_space<vmem>>, %arg11: memref<1x3x256xf32, #tpu.memory_space<vmem>>, %arg12: memref<15x512xf32, #tpu.memory_space<vmem>>, %arg13: memref<135x256xf32, #tpu.memory_space<vmem>>) attributes {dimension_semantics = [#tpu.dimension_semantics<parallel>], iteration_bounds = array<i64: 2>, scalar_prefetch = 0 : i64, scratch_operands = 2 : i64, tpu.core_type = #tpu.core_type<tc>, window_params = [{transform_indices = @transform_0, window_bounds = array<i64: 1, 4, 1>}, {transform_indices = @transform_1, window_bounds = array<i64: 1, 3, 256>}, {pipeline_mode = #tpu.pipeline_mode<synchronous>, transform_indices = @transform_2, window_bounds = array<i64: 8, 27>}, {pipeline_mode = #tpu.pipeline_mode<synchronous>, transform_indices = @transform_3, window_bounds = array<i64: 8, 1>}, {pipeline_mode = #tpu.pipeline_mode<synchronous>, transform_indices = @transform_4, window_bounds = array<i64: 8, 72>}, {pipeline_mode = #tpu.pipeline_mode<synchronous>, transform_indices = @transform_5, window_bounds = array<i64: 8, 1>}, {pipeline_mode = #tpu.pipeline_mode<synchronous>, transform_indices = @transform_6, window_bounds = array<i64: 8, 135>}, {pipeline_mode = #tpu.pipeline_mode<synchronous>, transform_indices = @transform_7, window_bounds = array<i64: 8, 1>}, {pipeline_mode = #tpu.pipeline_mode<synchronous>, transform_indices = @transform_8, window_bounds = array<i64: 3, 8>}, {pipeline_mode = #tpu.pipeline_mode<synchronous>, transform_indices = @transform_9, window_bounds = array<i64: 3, 1>}, {transform_indices = @transform_10, window_bounds = array<i64: 1, 3, 256>}]} {
    %0 = tpu.iota {dimensions = array<i32: 1>} : vector<1x256xi32>
    %c16_i32 = arith.constant 16 : i32
    %c0_i32 = arith.constant 0 : i32
    %1 = arith.cmpi eq, %c16_i32, %c0_i32 : i32
    %c1_i32 = arith.constant 1 : i32
    %2 = arith.select %1, %c1_i32, %c16_i32 : i32
    %3 = vector.broadcast %2 : i32 to vector<1x256xi32>
    %4 = arith.remsi %0, %3 : vector<1x256xi32>
    %c0_i32_0 = arith.constant 0 : i32
    %5 = vector.broadcast %c0_i32_0 : i32 to vector<1x256xi32>
    %6 = arith.cmpi ne, %4, %5 : vector<1x256xi32>
    %c0_i32_1 = arith.constant 0 : i32
    %7 = vector.broadcast %c0_i32_1 : i32 to vector<1x256xi32>
    %8 = arith.cmpi slt, %4, %7 : vector<1x256xi32>
    %c0_i32_2 = arith.constant 0 : i32
    %9 = arith.cmpi slt, %2, %c0_i32_2 : i32
    %10 = vector.broadcast %9 : i1 to vector<1x256xi1>
    %11 = vector.broadcast %10 : vector<1x256xi1> to vector<1x256xi1>
    %12 = arith.xori %8, %11 : vector<1x256xi1>
    %13 = arith.andi %12, %6 : vector<1x256xi1>
    %14 = vector.broadcast %2 : i32 to vector<1x256xi32>
    %15 = arith.addi %4, %14 : vector<1x256xi32>
    %16 = arith.select %13, %15, %4 : vector<1x256xi1>, vector<1x256xi32>
    %c0_i32_3 = arith.constant 0 : i32
    %17 = vector.broadcast %c0_i32_3 : i32 to vector<1x256xi32>
    %18 = arith.cmpi sgt, %16, %17 : vector<1x256xi32>
    %19 = arith.extui %18 : vector<1x256xi1> to vector<1x256xi32>
    %20 = arith.sitofp %19 : vector<1x256xi32> to vector<1x256xf32>
    %c15_i32 = arith.constant 15 : i32
    %21 = vector.broadcast %c15_i32 : i32 to vector<1x256xi32>
    %22 = arith.cmpi slt, %16, %21 : vector<1x256xi32>
    %23 = arith.extui %22 : vector<1x256xi1> to vector<1x256xi32>
    %24 = arith.sitofp %23 : vector<1x256xi32> to vector<1x256xf32>
    %cst = arith.constant 0.000000e+00 : f32
    %25 = vector.broadcast %cst : f32 to vector<15x128xf32>
    %c0 = arith.constant 0 : index
    %c0_4 = arith.constant 0 : index
    %26 = vector.load %arg12[%c0, %c0_4] : memref<15x512xf32, #tpu.memory_space<vmem>>, vector<15x128xf32>
    tpu.vector_store %arg12[%c0, %c0_4], %25 {strides = array<i32>} : memref<15x512xf32, #tpu.memory_space<vmem>>, vector<15x128xf32>,
    %cst_5 = arith.constant 0.000000e+00 : f32
    %27 = vector.broadcast %cst_5 : f32 to vector<15x128xf32>
    %c0_6 = arith.constant 0 : index
    %c384 = arith.constant 384 : index
    %28 = vector.load %arg12[%c0_6, %c384] : memref<15x512xf32, #tpu.memory_space<vmem>>, vector<15x128xf32>
    tpu.vector_store %arg12[%c0_6, %c384], %27 {strides = array<i32>} : memref<15x512xf32, #tpu.memory_space<vmem>>, vector<15x128xf32>,
    %c0_7 = arith.constant 0 : index
    %c0_8 = arith.constant 0 : index
    %c0_9 = arith.constant 0 : index
    %29 = vector.load %arg1[%c0_7, %c0_8, %c0_9] : memref<1x4x1xf32, #tpu.memory_space<vmem>>, vector<1x4x1xf32>
    %30 = vector.shape_cast %29 : vector<1x4x1xf32> to vector<4x1xf32>
    %31 = vector.shape_cast %30 : vector<4x1xf32> to vector<4x1xf32>
    %32 = vector.broadcast %31 : vector<4x1xf32> to vector<4x256xf32>
    %c8 = arith.constant 8 : index
    %c128 = arith.constant 128 : index
    %33 = vector.load %arg12[%c8, %c128] : memref<15x512xf32, #tpu.memory_space<vmem>>, vector<4x256xf32>
    tpu.vector_store %arg12[%c8, %c128], %32 {strides = array<i32>} : memref<15x512xf32, #tpu.memory_space<vmem>>, vector<4x256xf32>,
    %c0_10 = arith.constant 0 : index
    %c0_11 = arith.constant 0 : index
    %c0_12 = arith.constant 0 : index
    %34 = vector.load %arg2[%c0_10, %c0_11, %c0_12] : memref<1x3x256xf32, #tpu.memory_space<vmem>>, vector<1x3x256xf32>
    %35 = vector.shape_cast %34 : vector<1x3x256xf32> to vector<3x256xf32>
    %c12 = arith.constant 12 : index
    %c128_13 = arith.constant 128 : index
    %36 = vector.load %arg12[%c12, %c128_13] : memref<15x512xf32, #tpu.memory_space<vmem>>, vector<3x256xf32>
    tpu.vector_store %arg12[%c12, %c128_13], %35 {strides = array<i32>} : memref<15x512xf32, #tpu.memory_space<vmem>>, vector<3x256xf32>,
    %c0_14 = arith.constant 0 : index
    %c0_15 = arith.constant 0 : index
    %37 = vector.load %arg3[%c0_14, %c0_15] : memref<8x27xf32, #tpu.memory_space<vmem>>, vector<8x27xf32>
    %c0_16 = arith.constant 0 : index
    %c0_17 = arith.constant 0 : index
    %38 = vector.load %arg4[%c0_16, %c0_17] : memref<8x1xf32, #tpu.memory_space<vmem>>, vector<8x1xf32>
    %c12_18 = arith.constant 12 : index
    %c111 = arith.constant 111 : index
    %39 = vector.load %arg12[%c12_18, %c111] : memref<15x512xf32, #tpu.memory_space<vmem>>, vector<3x256xf32>
    %40 = vector.broadcast %20 : vector<1x256xf32> to vector<3x256xf32>
    %41 = arith.mulf %39, %40 : vector<3x256xf32>
    %c0_19 = arith.constant 0 : index
    %c0_20 = arith.constant 0 : index
    %42 = vector.load %arg13[%c0_19, %c0_20] : memref<135x256xf32, #tpu.memory_space<vmem>>, vector<3x256xf32>
    tpu.vector_store %arg13[%c0_19, %c0_20], %41 {strides = array<i32>} : memref<135x256xf32, #tpu.memory_space<vmem>>, vector<3x256xf32>,
    %c12_21 = arith.constant 12 : index
    %c112 = arith.constant 112 : index
    %43 = vector.load %arg12[%c12_21, %c112] : memref<15x512xf32, #tpu.memory_space<vmem>>, vector<3x256xf32>
    %c3 = arith.constant 3 : index
    %c0_22 = arith.constant 0 : index
    %44 = vector.load %arg13[%c3, %c0_22] : memref<135x256xf32, #tpu.memory_space<vmem>>, vector<3x256xf32>
    tpu.vector_store %arg13[%c3, %c0_22], %43 {strides = array<i32>} : memref<135x256xf32, #tpu.memory_space<vmem>>, vector<3x256xf32>,
    %c12_23 = arith.constant 12 : index
    %c113 = arith.constant 113 : index
    %45 = vector.load %arg12[%c12_23, %c113] : memref<15x512xf32, #tpu.memory_space<vmem>>, vector<3x256xf32>
    %46 = vector.broadcast %24 : vector<1x256xf32> to vector<3x256xf32>
    %47 = arith.mulf %45, %46 : vector<3x256xf32>
    %c6 = arith.constant 6 : index
    %c0_24 = arith.constant 0 : index
    %48 = vector.load %arg13[%c6, %c0_24] : memref<135x256xf32, #tpu.memory_space<vmem>>, vector<3x256xf32>
    tpu.vector_store %arg13[%c6, %c0_24], %47 {strides = array<i32>} : memref<135x256xf32, #tpu.memory_space<vmem>>, vector<3x256xf32>,
    %c12_25 = arith.constant 12 : index
    %c127 = arith.constant 127 : index
    %49 = vector.load %arg12[%c12_25, %c127] : memref<15x512xf32, #tpu.memory_space<vmem>>, vector<3x256xf32>
    %50 = vector.broadcast %20 : vector<1x256xf32> to vector<3x256xf32>
    %51 = arith.mulf %49, %50 : vector<3x256xf32>
    %c9 = arith.constant 9 : index
    %c0_26 = arith.constant 0 : index
    %52 = vector.load %arg13[%c9, %c0_26] : memref<135x256xf32, #tpu.memory_space<vmem>>, vector<3x256xf32>
    tpu.vector_store %arg13[%c9, %c0_26], %51 {strides = array<i32>} : memref<135x256xf32, #tpu.memory_space<vmem>>, vector<3x256xf32>,
    %c12_27 = arith.constant 12 : index
    %c128_28 = arith.constant 128 : index
    %53 = vector.load %arg12[%c12_27, %c128_28] : memref<15x512xf32, #tpu.memory_space<vmem>>, vector<3x256xf32>
    %c12_29 = arith.constant 12 : index
    %c0_30 = arith.constant 0 : index
    %54 = vector.load %arg13[%c12_29, %c0_30] : memref<135x256xf32, #tpu.memory_space<vmem>>, vector<3x256xf32>
    tpu.vector_store %arg13[%c12_29, %c0_30], %53 {strides = array<i32>} : memref<135x256xf32, #tpu.memory_space<vmem>>, vector<3x256xf32>,
    %c12_31 = arith.constant 12 : index
    %c129 = arith.constant 129 : index
    %55 = vector.load %arg12[%c12_31, %c129] : memref<15x512xf32, #tpu.memory_space<vmem>>, vector<3x256xf32>
    %56 = vector.broadcast %24 : vector<1x256xf32> to vector<3x256xf32>
    %57 = arith.mulf %55, %56 : vector<3x256xf32>
    %c15 = arith.constant 15 : index
    %c0_32 = arith.constant 0 : index
    %58 = vector.load %arg13[%c15, %c0_32] : memref<135x256xf32, #tpu.memory_space<vmem>>, vector<3x256xf32>
    tpu.vector_store %arg13[%c15, %c0_32], %57 {strides = array<i32>} : memref<135x256xf32, #tpu.memory_space<vmem>>, vector<3x256xf32>,
    %c12_33 = arith.constant 12 : index
    %c143 = arith.constant 143 : index
    %59 = vector.load %arg12[%c12_33, %c143] : memref<15x512xf32, #tpu.memory_space<vmem>>, vector<3x256xf32>
    %60 = vector.broadcast %20 : vector<1x256xf32> to vector<3x256xf32>
    %61 = arith.mulf %59, %60 : vector<3x256xf32>
    %c18 = arith.constant 18 : index
    %c0_34 = arith.constant 0 : index
    %62 = vector.load %arg13[%c18, %c0_34] : memref<135x256xf32, #tpu.memory_space<vmem>>, vector<3x256xf32>
    tpu.vector_store %arg13[%c18, %c0_34], %61 {strides = array<i32>} : memref<135x256xf32, #tpu.memory_space<vmem>>, vector<3x256xf32>,
    %c12_35 = arith.constant 12 : index
    %c144 = arith.constant 144 : index
    %63 = vector.load %arg12[%c12_35, %c144] : memref<15x512xf32, #tpu.memory_space<vmem>>, vector<3x256xf32>
    %c21 = arith.constant 21 : index
    %c0_36 = arith.constant 0 : index
    %64 = vector.load %arg13[%c21, %c0_36] : memref<135x256xf32, #tpu.memory_space<vmem>>, vector<3x256xf32>
    tpu.vector_store %arg13[%c21, %c0_36], %63 {strides = array<i32>} : memref<135x256xf32, #tpu.memory_space<vmem>>, vector<3x256xf32>,
    %c12_37 = arith.constant 12 : index
    %c145 = arith.constant 145 : index
    %65 = vector.load %arg12[%c12_37, %c145] : memref<15x512xf32, #tpu.memory_space<vmem>>, vector<3x256xf32>
    %66 = vector.broadcast %24 : vector<1x256xf32> to vector<3x256xf32>
    %67 = arith.mulf %65, %66 : vector<3x256xf32>
    %c24 = arith.constant 24 : index
    %c0_38 = arith.constant 0 : index
    %68 = vector.load %arg13[%c24, %c0_38] : memref<135x256xf32, #tpu.memory_space<vmem>>, vector<3x256xf32>
    tpu.vector_store %arg13[%c24, %c0_38], %67 {strides = array<i32>} : memref<135x256xf32, #tpu.memory_space<vmem>>, vector<3x256xf32>,
    %c0_39 = arith.constant 0 : index
    %c0_40 = arith.constant 0 : index
    %69 = vector.load %arg13[%c0_39, %c0_40] : memref<135x256xf32, #tpu.memory_space<vmem>>, vector<27x256xf32>
    %cst_41 = arith.constant dense<0.000000e+00> : vector<8x256xf32>
    %70 = tpu.matmul %37, %69, %cst_41 {dimension_numbers = #tpu.dot_dimension_numbers<[1], [0], [0], [1], [0, 0, 1, 1], [], []>} : vector<8x27xf32>, vector<27x256xf32>, vector<8x256xf32> -> vector<8x256xf32>
    %71 = vector.broadcast %38 : vector<8x1xf32> to vector<8x256xf32>
    %72 = arith.addf %70, %71 : vector<8x256xf32>
    %cst_42 = arith.constant 5.000000e-01 : f32
    %73 = vector.broadcast %cst_42 : f32 to vector<8x256xf32>
    %74 = arith.mulf %73, %72 : vector<8x256xf32>
    %cst_43 = arith.constant 4.471500e-02 : f32
    %75 = vector.broadcast %cst_43 : f32 to vector<8x256xf32>
    %76 = arith.mulf %75, %72 : vector<8x256xf32>
    %77 = arith.mulf %76, %72 : vector<8x256xf32>
    %78 = arith.mulf %77, %72 : vector<8x256xf32>
    %79 = arith.addf %72, %78 : vector<8x256xf32>
    %cst_44 = arith.constant 0.797884583 : f32
    %80 = vector.broadcast %cst_44 : f32 to vector<8x256xf32>
    %81 = arith.mulf %80, %79 : vector<8x256xf32>
    %82 = math.tanh %81 : vector<8x256xf32>
    %cst_45 = arith.constant 1.000000e+00 : f32
    %83 = vector.broadcast %cst_45 : f32 to vector<8x256xf32>
    %84 = arith.addf %83, %82 : vector<8x256xf32>
    %85 = arith.mulf %74, %84 : vector<8x256xf32>
    %c0_46 = arith.constant 0 : index
    %c128_47 = arith.constant 128 : index
    %86 = vector.load %arg12[%c0_46, %c128_47] : memref<15x512xf32, #tpu.memory_space<vmem>>, vector<8x256xf32>
    tpu.vector_store %arg12[%c0_46, %c128_47], %85 {strides = array<i32>} : memref<15x512xf32, #tpu.memory_space<vmem>>, vector<8x256xf32>,
    %c0_48 = arith.constant 0 : index
    %c0_49 = arith.constant 0 : index
    %87 = vector.load %arg5[%c0_48, %c0_49] : memref<8x72xf32, #tpu.memory_space<vmem>>, vector<8x72xf32>
    %c0_50 = arith.constant 0 : index
    %c0_51 = arith.constant 0 : index
    %88 = vector.load %arg6[%c0_50, %c0_51] : memref<8x1xf32, #tpu.memory_space<vmem>>, vector<8x1xf32>
    %c0_52 = arith.constant 0 : index
    %c111_53 = arith.constant 111 : index
    %89 = vector.load %arg12[%c0_52, %c111_53] : memref<15x512xf32, #tpu.memory_space<vmem>>, vector<8x256xf32>
    %90 = vector.broadcast %20 : vector<1x256xf32> to vector<8x256xf32>
    %91 = arith.mulf %89, %90 : vector<8x256xf32>
    %c0_54 = arith.constant 0 : index
    %c0_55 = arith.constant 0 : index
    %92 = vector.load %arg13[%c0_54, %c0_55] : memref<135x256xf32, #tpu.memory_space<vmem>>, vector<8x256xf32>
    tpu.vector_store %arg13[%c0_54, %c0_55], %91 {strides = array<i32>} : memref<135x256xf32, #tpu.memory_space<vmem>>, vector<8x256xf32>,
    %c0_56 = arith.constant 0 : index
    %c112_57 = arith.constant 112 : index
    %93 = vector.load %arg12[%c0_56, %c112_57] : memref<15x512xf32, #tpu.memory_space<vmem>>, vector<8x256xf32>
    %c8_58 = arith.constant 8 : index
    %c0_59 = arith.constant 0 : index
    %94 = vector.load %arg13[%c8_58, %c0_59] : memref<135x256xf32, #tpu.memory_space<vmem>>, vector<8x256xf32>
    tpu.vector_store %arg13[%c8_58, %c0_59], %93 {strides = array<i32>} : memref<135x256xf32, #tpu.memory_space<vmem>>, vector<8x256xf32>,
    %c0_60 = arith.constant 0 : index
    %c113_61 = arith.constant 113 : index
    %95 = vector.load %arg12[%c0_60, %c113_61] : memref<15x512xf32, #tpu.memory_space<vmem>>, vector<8x256xf32>
    %96 = vector.broadcast %24 : vector<1x256xf32> to vector<8x256xf32>
    %97 = arith.mulf %95, %96 : vector<8x256xf32>
    %c16 = arith.constant 16 : index
    %c0_62 = arith.constant 0 : index
    %98 = vector.load %arg13[%c16, %c0_62] : memref<135x256xf32, #tpu.memory_space<vmem>>, vector<8x256xf32>
    tpu.vector_store %arg13[%c16, %c0_62], %97 {strides = array<i32>} : memref<135x256xf32, #tpu.memory_space<vmem>>, vector<8x256xf32>,
    %c0_63 = arith.constant 0 : index
    %c127_64 = arith.constant 127 : index
    %99 = vector.load %arg12[%c0_63, %c127_64] : memref<15x512xf32, #tpu.memory_space<vmem>>, vector<8x256xf32>
    %100 = vector.broadcast %20 : vector<1x256xf32> to vector<8x256xf32>
    %101 = arith.mulf %99, %100 : vector<8x256xf32>
    %c24_65 = arith.constant 24 : index
    %c0_66 = arith.constant 0 : index
    %102 = vector.load %arg13[%c24_65, %c0_66] : memref<135x256xf32, #tpu.memory_space<vmem>>, vector<8x256xf32>
    tpu.vector_store %arg13[%c24_65, %c0_66], %101 {strides = array<i32>} : memref<135x256xf32, #tpu.memory_space<vmem>>, vector<8x256xf32>,
    %c0_67 = arith.constant 0 : index
    %c128_68 = arith.constant 128 : index
    %103 = vector.load %arg12[%c0_67, %c128_68] : memref<15x512xf32, #tpu.memory_space<vmem>>, vector<8x256xf32>
    %c32 = arith.constant 32 : index
    %c0_69 = arith.constant 0 : index
    %104 = vector.load %arg13[%c32, %c0_69] : memref<135x256xf32, #tpu.memory_space<vmem>>, vector<8x256xf32>
    tpu.vector_store %arg13[%c32, %c0_69], %103 {strides = array<i32>} : memref<135x256xf32, #tpu.memory_space<vmem>>, vector<8x256xf32>,
    %c0_70 = arith.constant 0 : index
    %c129_71 = arith.constant 129 : index
    %105 = vector.load %arg12[%c0_70, %c129_71] : memref<15x512xf32, #tpu.memory_space<vmem>>, vector<8x256xf32>
    %106 = vector.broadcast %24 : vector<1x256xf32> to vector<8x256xf32>
    %107 = arith.mulf %105, %106 : vector<8x256xf32>
    %c40 = arith.constant 40 : index
    %c0_72 = arith.constant 0 : index
    %108 = vector.load %arg13[%c40, %c0_72] : memref<135x256xf32, #tpu.memory_space<vmem>>, vector<8x256xf32>
    tpu.vector_store %arg13[%c40, %c0_72], %107 {strides = array<i32>} : memref<135x256xf32, #tpu.memory_space<vmem>>, vector<8x256xf32>,
    %c0_73 = arith.constant 0 : index
    %c143_74 = arith.constant 143 : index
    %109 = vector.load %arg12[%c0_73, %c143_74] : memref<15x512xf32, #tpu.memory_space<vmem>>, vector<8x256xf32>
    %110 = vector.broadcast %20 : vector<1x256xf32> to vector<8x256xf32>
    %111 = arith.mulf %109, %110 : vector<8x256xf32>
    %c48 = arith.constant 48 : index
    %c0_75 = arith.constant 0 : index
    %112 = vector.load %arg13[%c48, %c0_75] : memref<135x256xf32, #tpu.memory_space<vmem>>, vector<8x256xf32>
    tpu.vector_store %arg13[%c48, %c0_75], %111 {strides = array<i32>} : memref<135x256xf32, #tpu.memory_space<vmem>>, vector<8x256xf32>,
    %c0_76 = arith.constant 0 : index
    %c144_77 = arith.constant 144 : index
    %113 = vector.load %arg12[%c0_76, %c144_77] : memref<15x512xf32, #tpu.memory_space<vmem>>, vector<8x256xf32>
    %c56 = arith.constant 56 : index
    %c0_78 = arith.constant 0 : index
    %114 = vector.load %arg13[%c56, %c0_78] : memref<135x256xf32, #tpu.memory_space<vmem>>, vector<8x256xf32>
    tpu.vector_store %arg13[%c56, %c0_78], %113 {strides = array<i32>} : memref<135x256xf32, #tpu.memory_space<vmem>>, vector<8x256xf32>,
    %c0_79 = arith.constant 0 : index
    %c145_80 = arith.constant 145 : index
    %115 = vector.load %arg12[%c0_79, %c145_80] : memref<15x512xf32, #tpu.memory_space<vmem>>, vector<8x256xf32>
    %116 = vector.broadcast %24 : vector<1x256xf32> to vector<8x256xf32>
    %117 = arith.mulf %115, %116 : vector<8x256xf32>
    %c64 = arith.constant 64 : index
    %c0_81 = arith.constant 0 : index
    %118 = vector.load %arg13[%c64, %c0_81] : memref<135x256xf32, #tpu.memory_space<vmem>>, vector<8x256xf32>
    tpu.vector_store %arg13[%c64, %c0_81], %117 {strides = array<i32>} : memref<135x256xf32, #tpu.memory_space<vmem>>, vector<8x256xf32>,
    %c0_82 = arith.constant 0 : index
    %c0_83 = arith.constant 0 : index
    %119 = vector.load %arg13[%c0_82, %c0_83] : memref<135x256xf32, #tpu.memory_space<vmem>>, vector<72x256xf32>
    %cst_84 = arith.constant dense<0.000000e+00> : vector<8x256xf32>
    %120 = tpu.matmul %87, %119, %cst_84 {dimension_numbers = #tpu.dot_dimension_numbers<[1], [0], [0], [1], [0, 0, 1, 1], [], []>} : vector<8x72xf32>, vector<72x256xf32>, vector<8x256xf32> -> vector<8x256xf32>
    %121 = vector.broadcast %88 : vector<8x1xf32> to vector<8x256xf32>
    %122 = arith.addf %120, %121 : vector<8x256xf32>
    %cst_85 = arith.constant 5.000000e-01 : f32
    %123 = vector.broadcast %cst_85 : f32 to vector<8x256xf32>
    %124 = arith.mulf %123, %122 : vector<8x256xf32>
    %cst_86 = arith.constant 4.471500e-02 : f32
    %125 = vector.broadcast %cst_86 : f32 to vector<8x256xf32>
    %126 = arith.mulf %125, %122 : vector<8x256xf32>
    %127 = arith.mulf %126, %122 : vector<8x256xf32>
    %128 = arith.mulf %127, %122 : vector<8x256xf32>
    %129 = arith.addf %122, %128 : vector<8x256xf32>
    %cst_87 = arith.constant 0.797884583 : f32
    %130 = vector.broadcast %cst_87 : f32 to vector<8x256xf32>
    %131 = arith.mulf %130, %129 : vector<8x256xf32>
    %132 = math.tanh %131 : vector<8x256xf32>
    %cst_88 = arith.constant 1.000000e+00 : f32
    %133 = vector.broadcast %cst_88 : f32 to vector<8x256xf32>
    %134 = arith.addf %133, %132 : vector<8x256xf32>
    %135 = arith.mulf %124, %134 : vector<8x256xf32>
    %c0_89 = arith.constant 0 : index
    %c128_90 = arith.constant 128 : index
    %136 = vector.load %arg12[%c0_89, %c128_90] : memref<15x512xf32, #tpu.memory_space<vmem>>, vector<8x256xf32>
    tpu.vector_store %arg12[%c0_89, %c128_90], %135 {strides = array<i32>} : memref<15x512xf32, #tpu.memory_space<vmem>>, vector<8x256xf32>,
    %c0_91 = arith.constant 0 : index
    %c0_92 = arith.constant 0 : index
    %137 = vector.load %arg7[%c0_91, %c0_92] : memref<8x135xf32, #tpu.memory_space<vmem>>, vector<8x135xf32>
    %c0_93 = arith.constant 0 : index
    %c0_94 = arith.constant 0 : index
    %138 = vector.load %arg8[%c0_93, %c0_94] : memref<8x1xf32, #tpu.memory_space<vmem>>, vector<8x1xf32>
    %c0_95 = arith.constant 0 : index
    %c111_96 = arith.constant 111 : index
    %139 = vector.load %arg12[%c0_95, %c111_96] : memref<15x512xf32, #tpu.memory_space<vmem>>, vector<15x256xf32>
    %140 = vector.broadcast %20 : vector<1x256xf32> to vector<15x256xf32>
    %141 = arith.mulf %139, %140 : vector<15x256xf32>
    %c0_97 = arith.constant 0 : index
    %c0_98 = arith.constant 0 : index
    %142 = vector.load %arg13[%c0_97, %c0_98] : memref<135x256xf32, #tpu.memory_space<vmem>>, vector<15x256xf32>
    tpu.vector_store %arg13[%c0_97, %c0_98], %141 {strides = array<i32>} : memref<135x256xf32, #tpu.memory_space<vmem>>, vector<15x256xf32>,
    %c0_99 = arith.constant 0 : index
    %c112_100 = arith.constant 112 : index
    %143 = vector.load %arg12[%c0_99, %c112_100] : memref<15x512xf32, #tpu.memory_space<vmem>>, vector<15x256xf32>
    %c15_101 = arith.constant 15 : index
    %c0_102 = arith.constant 0 : index
    %144 = vector.load %arg13[%c15_101, %c0_102] : memref<135x256xf32, #tpu.memory_space<vmem>>, vector<15x256xf32>
    tpu.vector_store %arg13[%c15_101, %c0_102], %143 {strides = array<i32>} : memref<135x256xf32, #tpu.memory_space<vmem>>, vector<15x256xf32>,
    %c0_103 = arith.constant 0 : index
    %c113_104 = arith.constant 113 : index
    %145 = vector.load %arg12[%c0_103, %c113_104] : memref<15x512xf32, #tpu.memory_space<vmem>>, vector<15x256xf32>
    %146 = vector.broadcast %24 : vector<1x256xf32> to vector<15x256xf32>
    %147 = arith.mulf %145, %146 : vector<15x256xf32>
    %c30 = arith.constant 30 : index
    %c0_105 = arith.constant 0 : index
    %148 = vector.load %arg13[%c30, %c0_105] : memref<135x256xf32, #tpu.memory_space<vmem>>, vector<15x256xf32>
    tpu.vector_store %arg13[%c30, %c0_105], %147 {strides = array<i32>} : memref<135x256xf32, #tpu.memory_space<vmem>>, vector<15x256xf32>,
    %c0_106 = arith.constant 0 : index
    %c127_107 = arith.constant 127 : index
    %149 = vector.load %arg12[%c0_106, %c127_107] : memref<15x512xf32, #tpu.memory_space<vmem>>, vector<15x256xf32>
    %150 = vector.broadcast %20 : vector<1x256xf32> to vector<15x256xf32>
    %151 = arith.mulf %149, %150 : vector<15x256xf32>
    %c45 = arith.constant 45 : index
    %c0_108 = arith.constant 0 : index
    %152 = vector.load %arg13[%c45, %c0_108] : memref<135x256xf32, #tpu.memory_space<vmem>>, vector<15x256xf32>
    tpu.vector_store %arg13[%c45, %c0_108], %151 {strides = array<i32>} : memref<135x256xf32, #tpu.memory_space<vmem>>, vector<15x256xf32>,
    %c0_109 = arith.constant 0 : index
    %c128_110 = arith.constant 128 : index
    %153 = vector.load %arg12[%c0_109, %c128_110] : memref<15x512xf32, #tpu.memory_space<vmem>>, vector<15x256xf32>
    %c60 = arith.constant 60 : index
    %c0_111 = arith.constant 0 : index
    %154 = vector.load %arg13[%c60, %c0_111] : memref<135x256xf32, #tpu.memory_space<vmem>>, vector<15x256xf32>
    tpu.vector_store %arg13[%c60, %c0_111], %153 {strides = array<i32>} : memref<135x256xf32, #tpu.memory_space<vmem>>, vector<15x256xf32>,
    %c0_112 = arith.constant 0 : index
    %c129_113 = arith.constant 129 : index
    %155 = vector.load %arg12[%c0_112, %c129_113] : memref<15x512xf32, #tpu.memory_space<vmem>>, vector<15x256xf32>
    %156 = vector.broadcast %24 : vector<1x256xf32> to vector<15x256xf32>
    %157 = arith.mulf %155, %156 : vector<15x256xf32>
    %c75 = arith.constant 75 : index
    %c0_114 = arith.constant 0 : index
    %158 = vector.load %arg13[%c75, %c0_114] : memref<135x256xf32, #tpu.memory_space<vmem>>, vector<15x256xf32>
    tpu.vector_store %arg13[%c75, %c0_114], %157 {strides = array<i32>} : memref<135x256xf32, #tpu.memory_space<vmem>>, vector<15x256xf32>,
    %c0_115 = arith.constant 0 : index
    %c143_116 = arith.constant 143 : index
    %159 = vector.load %arg12[%c0_115, %c143_116] : memref<15x512xf32, #tpu.memory_space<vmem>>, vector<15x256xf32>
    %160 = vector.broadcast %20 : vector<1x256xf32> to vector<15x256xf32>
    %161 = arith.mulf %159, %160 : vector<15x256xf32>
    %c90 = arith.constant 90 : index
    %c0_117 = arith.constant 0 : index
    %162 = vector.load %arg13[%c90, %c0_117] : memref<135x256xf32, #tpu.memory_space<vmem>>, vector<15x256xf32>
    tpu.vector_store %arg13[%c90, %c0_117], %161 {strides = array<i32>} : memref<135x256xf32, #tpu.memory_space<vmem>>, vector<15x256xf32>,
    %c0_118 = arith.constant 0 : index
    %c144_119 = arith.constant 144 : index
    %163 = vector.load %arg12[%c0_118, %c144_119] : memref<15x512xf32, #tpu.memory_space<vmem>>, vector<15x256xf32>
    %c105 = arith.constant 105 : index
    %c0_120 = arith.constant 0 : index
    %164 = vector.load %arg13[%c105, %c0_120] : memref<135x256xf32, #tpu.memory_space<vmem>>, vector<15x256xf32>
    tpu.vector_store %arg13[%c105, %c0_120], %163 {strides = array<i32>} : memref<135x256xf32, #tpu.memory_space<vmem>>, vector<15x256xf32>,
    %c0_121 = arith.constant 0 : index
    %c145_122 = arith.constant 145 : index
    %165 = vector.load %arg12[%c0_121, %c145_122] : memref<15x512xf32, #tpu.memory_space<vmem>>, vector<15x256xf32>
    %166 = vector.broadcast %24 : vector<1x256xf32> to vector<15x256xf32>
    %167 = arith.mulf %165, %166 : vector<15x256xf32>
    %c120 = arith.constant 120 : index
    %c0_123 = arith.constant 0 : index
    %168 = vector.load %arg13[%c120, %c0_123] : memref<135x256xf32, #tpu.memory_space<vmem>>, vector<15x256xf32>
    tpu.vector_store %arg13[%c120, %c0_123], %167 {strides = array<i32>} : memref<135x256xf32, #tpu.memory_space<vmem>>, vector<15x256xf32>,
    %c0_124 = arith.constant 0 : index
    %c0_125 = arith.constant 0 : index
    %169 = vector.load %arg13[%c0_124, %c0_125] : memref<135x256xf32, #tpu.memory_space<vmem>>, vector<135x256xf32>
    %cst_126 = arith.constant dense<0.000000e+00> : vector<8x256xf32>
    %170 = tpu.matmul %137, %169, %cst_126 {dimension_numbers = #tpu.dot_dimension_numbers<[1], [0], [0], [1], [0, 0, 1, 1], [], []>} : vector<8x135xf32>, vector<135x256xf32>, vector<8x256xf32> -> vector<8x256xf32>
    %171 = vector.broadcast %138 : vector<8x1xf32> to vector<8x256xf32>
    %172 = arith.addf %170, %171 : vector<8x256xf32>
    %cst_127 = arith.constant 5.000000e-01 : f32
    %173 = vector.broadcast %cst_127 : f32 to vector<8x256xf32>
    %174 = arith.mulf %173, %172 : vector<8x256xf32>
    %cst_128 = arith.constant 4.471500e-02 : f32
    %175 = vector.broadcast %cst_128 : f32 to vector<8x256xf32>
    %176 = arith.mulf %175, %172 : vector<8x256xf32>
    %177 = arith.mulf %176, %172 : vector<8x256xf32>
    %178 = arith.mulf %177, %172 : vector<8x256xf32>
    %179 = arith.addf %172, %178 : vector<8x256xf32>
    %cst_129 = arith.constant 0.797884583 : f32
    %180 = vector.broadcast %cst_129 : f32 to vector<8x256xf32>
    %181 = arith.mulf %180, %179 : vector<8x256xf32>
    %182 = math.tanh %181 : vector<8x256xf32>
    %cst_130 = arith.constant 1.000000e+00 : f32
    %183 = vector.broadcast %cst_130 : f32 to vector<8x256xf32>
    %184 = arith.addf %183, %182 : vector<8x256xf32>
    %185 = arith.mulf %174, %184 : vector<8x256xf32>
    %c0_131 = arith.constant 0 : index
    %c0_132 = arith.constant 0 : index
    %186 = vector.load %arg9[%c0_131, %c0_132] : memref<3x8xf32, #tpu.memory_space<vmem>>, vector<3x8xf32>
    %cst_133 = arith.constant dense<0.000000e+00> : vector<3x256xf32>
    %187 = tpu.matmul %186, %185, %cst_133 {dimension_numbers = #tpu.dot_dimension_numbers<[1], [0], [0], [1], [0, 0, 1, 1], [], []>} : vector<3x8xf32>, vector<8x256xf32>, vector<3x256xf32> -> vector<3x256xf32>
    %c0_134 = arith.constant 0 : index
    %c0_135 = arith.constant 0 : index
    %188 = vector.load %arg10[%c0_134, %c0_135] : memref<3x1xf32, #tpu.memory_space<vmem>>, vector<3x1xf32>
    %189 = vector.broadcast %188 : vector<3x1xf32> to vector<3x256xf32>
    %190 = arith.addf %187, %189 : vector<3x256xf32>
    %191 = math.tanh %190 : vector<3x256xf32>
    %c0_136 = arith.constant 0 : index
    %c0_137 = arith.constant 0 : index
    %c0_138 = arith.constant 0 : index
    %192 = vector.load %arg11[%c0_136, %c0_137, %c0_138] : memref<1x3x256xf32, #tpu.memory_space<vmem>>, vector<1x3x256xf32>
    %193 = vector.shape_cast %192 : vector<1x3x256xf32> to vector<3x256xf32>
    %194 = vector.shape_cast %191 : vector<3x256xf32> to vector<1x3x256xf32>
    tpu.vector_store %arg11[%c0_136, %c0_137, %c0_138], %194 {strides = array<i32>} : memref<1x3x256xf32, #tpu.memory_space<vmem>>, vector<1x3x256xf32>,
    return
  }
  func.func @transform_0(%arg0: i32) -> (i32, i32, i32) {
    %c0_i32 = arith.constant 0 : i32
    %c0_i32_0 = arith.constant 0 : i32
    %c0_i32_1 = arith.constant 0 : i32
    return %arg0, %c0_i32, %c0_i32_0 : i32, i32, i32
  }
  func.func @transform_1(%arg0: i32) -> (i32, i32, i32) {
    %c0_i32 = arith.constant 0 : i32
    %c0_i32_0 = arith.constant 0 : i32
    %c0_i32_1 = arith.constant 0 : i32
    return %arg0, %c0_i32, %c0_i32_0 : i32, i32, i32
  }
  func.func @transform_2(%arg0: i32) -> (i32, i32) {
    %c0_i32 = arith.constant 0 : i32
    %c0_i32_0 = arith.constant 0 : i32
    %c0_i32_1 = arith.constant 0 : i32
    return %c0_i32, %c0_i32_0 : i32, i32
  }
  func.func @transform_3(%arg0: i32) -> (i32, i32) {
    %c0_i32 = arith.constant 0 : i32
    %c0_i32_0 = arith.constant 0 : i32
    %c0_i32_1 = arith.constant 0 : i32
    return %c0_i32, %c0_i32_0 : i32, i32
  }
  func.func @transform_4(%arg0: i32) -> (i32, i32) {
    %c0_i32 = arith.constant 0 : i32
    %c0_i32_0 = arith.constant 0 : i32
    %c0_i32_1 = arith.constant 0 : i32
    return %c0_i32, %c0_i32_0 : i32, i32
  }
  func.func @transform_5(%arg0: i32) -> (i32, i32) {
    %c0_i32 = arith.constant 0 : i32
    %c0_i32_0 = arith.constant 0 : i32
    %c0_i32_1 = arith.constant 0 : i32
    return %c0_i32, %c0_i32_0 : i32, i32
  }
  func.func @transform_6(%arg0: i32) -> (i32, i32) {
    %c0_i32 = arith.constant 0 : i32
    %c0_i32_0 = arith.constant 0 : i32
    %c0_i32_1 = arith.constant 0 : i32
    return %c0_i32, %c0_i32_0 : i32, i32
  }
  func.func @transform_7(%arg0: i32) -> (i32, i32) {
    %c0_i32 = arith.constant 0 : i32
    %c0_i32_0 = arith.constant 0 : i32
    %c0_i32_1 = arith.constant 0 : i32
    return %c0_i32, %c0_i32_0 : i32, i32
  }
  func.func @transform_8(%arg0: i32) -> (i32, i32) {
    %c0_i32 = arith.constant 0 : i32
    %c0_i32_0 = arith.constant 0 : i32
    %c0_i32_1 = arith.constant 0 : i32
    return %c0_i32, %c0_i32_0 : i32, i32
  }
  func.func @transform_9(%arg0: i32) -> (i32, i32) {
    %c0_i32 = arith.constant 0 : i32
    %c0_i32_0 = arith.constant 0 : i32
    %c0_i32_1 = arith.constant 0 : i32
    return %c0_i32, %c0_i32_0 : i32, i32
  }
  func.func @transform_10(%arg0: i32) -> (i32, i32, i32) {
    %c0_i32 = arith.constant 0 : i32
    %c0_i32_0 = arith.constant 0 : i32
    %c0_i32_1 = arith.constant 0 : i32
    return %arg0, %c0_i32, %c0_i32_0 : i32, i32, i32
  }
}

</mosaic_0001>

<bundles_post_ra>
// kernel: tpu_custom_call.1
= control target key start
LH: loop header
LB: loop body
LE: loop exit
PB: predicated region body
PF: predicated region fallthrough
CT: control target
= control target key end

     0   :  { %s2094_s13 = smov 0   ;;  %s2746_s0 = inlined_call_operand.vmem [shape: f32[2,4,1], index: 0, kind: input, shape index: {}]   ;;  %s2747_s1 = inlined_call_operand.vmem [shape: f32[2,3,256], index: 1, kind: input, shape index: {}]   ;;  %s2748_s2 = inlined_call_operand.vmem [shape: f32[8,27], index: 2, kind: input, shape index: {}]   ;;  %s2749_s3 = inlined_call_operand.vmem [shape: f32[8,1], index: 3, kind: input, shape index: {}]   ;;  %s2750_s4 = inlined_call_operand.vmem [shape: f32[8,72], index: 4, kind: input, shape index: {}]   ;;  %s2751_s5 = inlined_call_operand.vmem [shape: f32[8,1], index: 5, kind: input, shape index: {}]   ;;  %s2752_s6 = inlined_call_operand.vmem [shape: f32[8,135], index: 6, kind: input, shape index: {}]   ;;  %s2753_s7 = inlined_call_operand.vmem [shape: f32[8,1], index: 7, kind: input, shape index: {}]   ;;  %s2754_s8 = inlined_call_operand.vmem [shape: f32[3,8], index: 8, kind: input, shape index: {}]   ;;  %s2755_s9 = inlined_call_operand.vmem [shape: f32[3,1], index: 9, kind: input, shape index: {}]   ;;  %s2756_s10 = inlined_call_operand.vmem [shape: f32[2,3,256], index: 10, kind: output, shape index: {}]  }
   0x1 LB: > { %s1858_s14 = sadd.s32 4294967295, %s2026_s13   ;;  %p1862_p0 = scmp.ge.s32.totalorder %s2026_s13, 1  ;;  %s2026_s13 = sphi %s2094_s13, %s20_s13  }
   0x2   : > { %p321_p1 = scmp.lt.s32.totalorder %s2026_s13, 3 }
   0x4   : > { %p322_p2 = pnand %p1862_p0, %p321_p1 }
   0x5   : > { %v377_v0 = vlaneseq (!%p322_p2)  ;;  %v2028_v1 = vmov (!%p322_p2), 0.0   ;;  %p363_p3 = scmp.lt.s32.totalorder (!%p322_p2), %s1858_s14, 1  ;;  %s2029_s19 = smov (!%p322_p2), 127   ;;  %v2037_v24 = vmov (!%p322_p2), 0   ;;  %vm445_vm4 = vcmask (!%p322_p2), 908288  }
   0x6   : > { %325 = sbr.rel (%p322_p2) target bundleno = 1597 (0x63d), region = 60  ;;  %417 = vst [vmem:[#allocation2 + $0x20] sm:$0x7f] (!%p322_p2), %v2028_v1  ;;  %419 = vst [vmem:[#allocation2 + $0x38] sm:$0x7f] (!%p322_p2), %v2028_v1  ;;  %778 = vmatprep.mubr.f32.mxu1 (!%p322_p2), %v2028_v1  ;;  %s2030_s20 = smov (!%p322_p2), 111   ;;  %1991 = vset.pattern.permute.xlu0 (!%p322_p2), %v2037_v24 }
   0x7   : > { %v378_v2 = vand.u32 (!%p322_p2), 127, %v377_v0  ;;  %s2031_s21 = smov (!%p322_p2), 113   ;;  %s2032_s22 = smov (!%p322_p2), 1   ;;  %1992 = vset.pattern.permute.xlu1 (!%p322_p2), %v2037_v24  ;;  %vm503_vm5 = vcmask (!%p322_p2), 924672   ;;  %vm539_vm6 = vcmask (!%p322_p2), 1039360   ;;  %vm523_vm7 = vcmask (!%p322_p2), 121856  }
   0x8   : > { %s2033_s23 = smov (!%p322_p2), 15   ;;  %s2034_s24 = smov (!%p322_p2), 17   ;;  %vm707_vm8 = vcmask (!%p322_p2), 1042432   ;;  %vm1212_vm9 = vcmask (!%p322_p2), 1045504   ;;  %vm1276_vm10 = vcmask (!%p322_p2), 1044480   ;;  %vm465_vm11 = vcmask (!%p322_p2), 138240  }
   0x9   : > { %v379_v3 = vadd.s32 (!%p322_p2), 128, %v378_v2  ;;  %v384_v4 = vand.u32 (!%p322_p2), 15, %v378_v2  ;;  %s2035_s25 = smov (!%p322_p2), 16   ;;  %s2036_s26 = smov (!%p322_p2), 112   ;;  %vm651_vm12 = vcmask (!%p322_p2), 916480   ;;  %vm487_vm13 = vcmask (!%p322_p2), 130048  }
   0xa   : > { %vm1430_vm14 = vcmask (!%p322_p2), 1041408   ;;  %vm559_vm15 = vcmask (!%p322_p2), 7168  }
   0xb   : > { %v391_v5 = vand.u32 (!%p322_p2), 15, %v379_v3  ;;  %vm404_vm0 = vcmp.gt.s32.totalorder (!%p322_p2), %v384_v4, 0  ;;  %vm410_vm1 = vcmp.lt.s32.totalorder (!%p322_p2), %v384_v4, 15 }
   0xc   : > { %v1868_v6 = vsel (!%p322_p2), %vm404_vm0, 1.0, %v2028_v1  ;;  %v1870_v8 = vsel (!%p322_p2), %vm410_vm1, 1.0, %v2028_v1  ;;  %vm2038_vm0 = vmmov (!%p322_p2), 1  }
   0xd   : > { %s2766_s14 = smov (!%p363_p3, %s1858_s14), 1  ;;  %vm405_vm2 = vcmp.gt.s32.totalorder %v391_v5, 0  ;;  %vm411_vm3 = vcmp.lt.s32.totalorder %v391_v5, 15  ;;  %v472_v14 = vld [vmem:[#allocation2 + $0x20] sm:$0x70]  ;;  %vm1889_vm1 = vmpackc.low %vm707_vm8, %vm2038_vm0  ;;  %vm1148_vm0 = vcmask 1046528  }
   0xe   : > { %v1869_v7 = vsel %vm405_vm2, 1.0, %v2028_v1  ;;  %v1871_v9 = vsel %vm411_vm3, 1.0, %v2028_v1  ;;  %s1882_s15 = sshll.u32 %s2766_s14, 3  ;;  %v638_v15 = vld [vmem:[#allocation2 + $0x38] sm:$0x70]  ;;  %v478_v16 = vrot.slane %v472_v14, 1 }
   0xf   : > { %v1971_v10 = vpack.i.bf16 %v1869_v7, %v1868_v6  ;;  %s371_s18 = scalar_lea.vmem %s2747_s1, %s1882_s15  ;;  %v1966_v12 = vpack.i.bf16 %v1871_v9, %v1870_v8  ;;  %v644_v17 = vrot.slane %v638_v15, 7  ;;  %v532_v27 = vld [vmem:[#allocation2 + $0x20] sm:$0x70]  ;;  %v606_v52 = vld [vmem:[#allocation2 + $0x38] sm:$0x70]  ;;  %vm703_vm2 = vcmask 220160   ;;  %s376_s17 = scalar_lea.vmem %s2756_s10, %s1882_s15 }
  0x10   : > { %v428_v11 = vld [vmem:[%s371_s18] sm:$0x77]  ;;  %v572_v58 = vld [vmem:[#allocation2 + $0x38] sm:$0x70]  ;;  %s1863_s16 = sshll.u32 %s2766_s14, 2  ;;  %vm996_vm3 = vcmask 588800  }
  0x11   : > { %1972 = vrot.lane.b32.xlu1 %v1971_v10, %s2029_s19  ;;  %1962 = vrot.lane.b32.xlu0 %v1971_v10, %s2030_s20  ;;  %433 = vst [vmem:[#allocation2 + $0x30] sm:$0x70] %v428_v11  ;;  %v430_v13 = vcombine.low %v428_v11, %v428_v11  ;;  %v436_v28 = vld [vmem:[#allocation2 + $0x20] sm:$0x70]  ;;  %s366_s27 = scalar_lea.vmem %s2746_s0, %s1863_s16 }
  0x12   : > { %v494_v38 = vld [vmem:[#allocation2 + $0x20] sm:$0x70] }
  0x13   : > { %432 = vst [vmem:[#allocation2 + $0x28] sm:$0x70] %v430_v13  ;;  %v1197_v11 = vld [vmem:[#allocation2 + $0x20] sm:$0x7f] }
  0x15   : > { %1967 = vrot.lane.b32.xlu0 %v1966_v12, %s2031_s21  ;;  %1977 = vrot.lane.b32.xlu1 %v1966_v12, %s2032_s22 }
  0x18   : > { %v474_v18 = vld [vmem:[#allocation2 + $0x30] sm:$0x70] }
  0x19   : > { %1982 = vrot.lane.b32.xlu0 %v1971_v10, %s2033_s23  ;;  %1987 = vrot.lane.b32.xlu1 %v1966_v12, %s2034_s24  ;;  %v480_v20 = vrot.slane %v474_v18, 1  ;;  %v637_v22 = vld [vmem:[#allocation2 + $0x30] sm:$0x70]  ;;  %v1261_v12 = vld [vmem:[#allocation2 + $0x20] sm:$0x7f] }
  0x1a   : > { %v473_v19 = vld [vmem:[#allocation2 + $0x28] sm:$0x70]  ;;  %v643_v23 = vrot.slane %v637_v22, 7  ;;  %v438_v32 = vld [vmem:[#allocation2 + $0x30] sm:$0x70] }
  0x1b   : > { %v479_v21 = vrot.slane %v473_v19, 1  ;;  %v570_v43 = vld [vmem:[#allocation2 + $0x28] sm:$0x70]  ;;  %v496_v45 = vld [vmem:[#allocation2 + $0x30] sm:$0x70] }
  0x1c   : > { %v534_v51 = vld [vmem:[#allocation2 + $0x30] sm:$0x70]  ;;  %v437_v59 = vld [vmem:[#allocation2 + $0x28] sm:$0x70]  ;;  %v1354_v19 = vld [vmem:[#allocation2 + $0x38] sm:$0x7f] }
  0x1d   : > { %481 = vrot.lane.b32.xlu1 %v478_v16, %s2035_s25  ;;  %649 = vrot.lane.b32.xlu0 %v644_v17, %s2036_s26 }
  0x21   : > { %485 = vrot.lane.b32.xlu1 %v480_v20, %s2035_s25  ;;  %483 = vrot.lane.b32.xlu0 %v479_v21, %s2035_s25  ;;  %v1417_v20 = vld [vmem:[#allocation2 + $0x38] sm:$0x7f] }
  0x25   : > { %647 = vrot.lane.b32.xlu1 %v643_v23, %s2036_s26  ;;  %v604_v23 = vld [vmem:[#allocation2 + $0x28] sm:$0x70] }
  0x83   : > { %v1973_v25 = vpop.permute.xlu1 %1972  ;;  %v1963_v26 = vpop.permute.xlu0 %1962 }
  0x84   : > { %v2128_v29 = vunpack.i.l.bf16 %v1973_v25  ;;  %v2130_v30 = vunpack.i.h.bf16 %v1963_v26  ;;  %v2132_v31 = vunpack.i.l.bf16 %v1963_v26  ;;  %v2143_v46 = vunpack.i.h.bf16 %v1973_v25 }
  0x86   : > { %v544_v33 = vmul.f32 %v2128_v29, %v532_v27  ;;  %v450_v34 = vmul.f32 %v2132_v31, %v436_v28  ;;  %v452_v37 = vmul.f32 %v2130_v30, %v438_v32  ;;  %v2157_v60 = vsel %vm445_vm4, %v2132_v31, %v2130_v30  ;;  %v495_v27 = vld [vmem:[#allocation2 + $0x28] sm:$0x70] }
  0x87   : > { %v1968_v35 = vpop.permute.xlu0 %1967  ;;  %v1978_v36 = vpop.permute.xlu1 %1977  ;;  %v546_v62 = vmul.f32 %v2143_v46, %v534_v51  ;;  %v2164_v0 = vmul.f32 0.0, %v2128_v29  ;;  %v451_v6 = vmul.f32 %v2157_v60, %v437_v59  ;;  %v605_v51 = vld [vmem:[#allocation2 + $0x30] sm:$0x70] }
  0x88   : > { %v2137_v39 = vunpack.i.h.bf16 %v1968_v35  ;;  %v2139_v40 = vunpack.i.l.bf16 %v1968_v35  ;;  %v550_v41 = vrot.slane %v544_v33, 3  ;;  %v456_v42 = vrot.slane %v450_v34, 4 }
  0x89   : > { %v2141_v44 = vunpack.i.l.bf16 %v1978_v36  ;;  %v2148_v48 = vunpack.i.h.bf16 %v1978_v36  ;;  %v458_v54 = vrot.slane %v452_v37, 4  ;;  %v552_v7 = vrot.slane %v546_v62, 3 }
  0x8a   : > { %553 = vrot.lane.b32.xlu1 %v550_v41, %s2032_s22  ;;  %459 = vrot.lane.b32.xlu0 %v456_v42, %s2034_s24  ;;  %v508_v47 = vmul.f32 %v2139_v40, %v494_v38  ;;  %v510_v57 = vmul.f32 %v2137_v39, %v496_v45  ;;  %v2174_v10 = vmul.f32 0.0, %v2139_v40  ;;  %v2181_v14 = vsel %vm503_vm5, %v2139_v40, %v2137_v39 }
  0x8b   : > { %v1983_v49 = vpop.permute.xlu0 %1982  ;;  %v581_v50 = vmul.f32 %v2141_v44, %v570_v43  ;;  %v1988_v53 = vpop.permute.xlu1 %1987  ;;  %v583_v5 = vmul.f32 %v2148_v48, %v572_v58  ;;  %v2171_v9 = vmul.f32 0.0, %v2148_v48  ;;  %v1277_v18 = vrot.slane %v2164_v0, 3  ;;  %v659_v58 = vld [vmem:[#allocation2 + $0x30] sm:$0x70] }
  0x8c   : > { %v514_v55 = vrot.slane %v508_v47, 6  ;;  %v2151_v56 = vunpack.i.h.bf16 %v1983_v49  ;;  %v516_v4 = vrot.slane %v510_v57, 6  ;;  %v2176_v13 = vunpack.i.l.bf16 %v1983_v49 }
  0x8d   : > { %v587_v61 = vrot.slane %v581_v50, 5  ;;  %v589_v21 = vrot.slane %v583_v5, 5  ;;  %v457_v22 = vrot.slane %v451_v6, 4  ;;  %v2189_v26 = vunpack.i.h.bf16 %v1988_v53  ;;  %v658_v6 = vld [vmem:[#allocation2 + $0x28] sm:$0x70] }
  0x8e   : > { %463 = vrot.lane.b32.xlu1 %v458_v54, %s2034_s24  ;;  %517 = vrot.lane.b32.xlu0 %v514_v55, %s2033_s23  ;;  %v617_v63 = vmul.f32 %v2151_v56, %v606_v52  ;;  %v2184_v15 = vmul.f32 0.0, %v2151_v56  ;;  %v1213_v28 = vrot.slane %v2174_v10, 2  ;;  %v2193_v32 = vmul.f32 %v2139_v40, %v1197_v11 }
  0x8f   : > { %v482_v2 = vpop.permute.xlu1 %481  ;;  %v650_v3 = vpop.permute.xlu0 %649  ;;  %v2196_v33 = vmul.f32 %v2128_v29, %v1261_v12  ;;  %v1369_v34 = vrot.slane %v2171_v9, 5  ;;  %v2202_v35 = vmul.f32 %v2148_v48, %v1354_v19  ;;  %v2205_v36 = vmul.f32 %v2151_v56, %v1417_v20 }
  0x90   : > { %v623_v8 = vrot.slane %v617_v63, 2  ;;  %v1433_v37 = vrot.slane %v2184_v15, 6  ;;  %v2208_v38 = vunpack.i.l.bf16 %v1988_v53  ;;  %v615_v40 = vmul.f32 %v2176_v13, %v604_v23  ;;  %v533_v53 = vld [vmem:[#allocation2 + $0x28] sm:$0x70] }
  0x91   : > { %v1216_v42 = vrot.slane %v2193_v32, 2  ;;  %v1280_v43 = vrot.slane %v2196_v33, 3  ;;  %v509_v45 = vmul.f32 %v2181_v14, %v495_v27  ;;  %v1374_v49 = vrot.slane %v2202_v35, 5  ;;  %v435_v27 = vld [vmem:[%s2749_s3] sm:$0xff] }
  0x92   : > { %521 = vrot.lane.b32.xlu1 %v516_v4, %s2033_s23  ;;  %590 = vrot.lane.b32.xlu0 %v587_v61, %s2029_s19  ;;  %v1438_v50 = vrot.slane %v2205_v36, 6  ;;  %v2223_v52 = vsel %vm523_vm7, %v2176_v13, %v2151_v56  ;;  %v2228_v54 = vsel %vm539_vm6, %v2128_v29, %v2143_v46  ;;  %v2263_v59 = vsel %vm465_vm11, %v2208_v38, %v2189_v26 }
  0x93   : > { %v486_v16 = vpop.permute.xlu1 %485  ;;  %v484_v17 = vpop.permute.xlu0 %483  ;;  %v2235_v55 = vsel %vm1212_vm9, %v1213_v28, %v1216_v42  ;;  %v2242_v56 = vsel %vm1276_vm10, %v1277_v18, %v1280_v43  ;;  %v2251_v29 = vsel %vm707_vm8, %v1369_v34, %v1374_v49  ;;  %v621_v61 = vrot.slane %v615_v40, 2 }
  0x94   : > { %v488_v24 = vsel %vm487_vm13, %v482_v2, %v484_v17  ;;  %v489_v25 = vsel %vm487_vm13, %v484_v17, %v486_v16  ;;  %v2258_v57 = vsel %vm1430_vm14, %v1433_v37, %v1438_v50  ;;  %v515_v62 = vrot.slane %v509_v45, 6  ;;  %v567_v16 = vld [vmem:[#allocation2 + $0x30] sm:$0x70]  ;;  %v566_v17 = vld [vmem:[#allocation2 + $0x28] sm:$0x70] }
  0x95   : > { %492 = vst [vmem:[#allocation3] sm:$0x38] %v488_v24  ;;  %493 = vst [vmem:[#allocation3 + $0x8] sm:$0x38] %v489_v25  ;;  %v616_v63 = vmul.f32 %v2223_v52, %v605_v51  ;;  %v545_v2 = vmul.f32 %v2228_v54, %v533_v53  ;;  %v2270_v4 = vsel %vm559_vm15, %v2141_v44, %v2148_v48  ;;  %v636_v24 = vld [vmem:[#allocation2 + $0x28] sm:$0x70] }
  0x96   : > { %557 = vrot.lane.b32.xlu1 %v552_v7, %s2032_s22  ;;  %628 = vrot.lane.b32.xlu0 %v623_v8, %s2031_s21  ;;  %v670_v5 = vmul.f32 %v2263_v59, %v659_v58  ;;  %v660_v7 = vld [vmem:[#allocation2 + $0x38] sm:$0x70]  ;;  %v669_v19 = vmul.f32 %v2208_v38, %v658_v6  ;;  %569 = vst [vmem:[#allocation3 + $0x18] sm:$0x70] %v567_v16  ;;  %568 = vst [vmem:[#allocation3 + $0x10] sm:$0x70] %v566_v17 }
  0x97   : > { %v2211_v41 = vpop.permute.xlu1 %647  ;;  %v622_v8 = vrot.slane %v616_v63, 2  ;;  %v551_v11 = vrot.slane %v545_v2, 3  ;;  %v671_v20 = vmul.f32 %v2189_v26, %v660_v7  ;;  %v642_v25 = vrot.slane %v636_v24, 7 }
  0x98   : > { %v653_v47 = vsel %vm651_vm12, %v2211_v41, %v650_v3  ;;  %v571_v3 = vld [vmem:[#allocation2 + $0x30] sm:$0x70]  ;;  %v676_v48 = vrot.slane %v670_v5, 4  ;;  %v2293_v40 = vmul.f32 0.0, %v2132_v31 }
  0x99   : > { %657 = vst [vmem:[#allocation3 + $0x28] sm:$0xe0] %v653_v47  ;;  %v582_v12 = vmul.f32 %v2270_v4, %v571_v3  ;;  %v677_v23 = vrot.slane %v671_v20, 4 }
  0x9a   : > { %594 = vrot.lane.b32.xlu1 %v589_v21, %s2029_s19  ;;  %461 = vrot.lane.b32.xlu0 %v457_v22, %s2034_s24  ;;  %v675_v22 = vrot.slane %v669_v19, 4 }
  0x9b   : > { %v588_v21 = vrot.slane %v582_v12, 5 }
  0x9e   : > { %624 = vrot.lane.b32.xlu1 %v621_v61, %s2031_s21  ;;  %519 = vrot.lane.b32.xlu0 %v515_v62, %s2033_s23 }
  0xa2   : > { %626 = vrot.lane.b32.xlu1 %v622_v8, %s2031_s21  ;;  %555 = vrot.lane.b32.xlu0 %v551_v11, %s2032_s22 }
  0xa6   : > { %680 = vrot.lane.b32.xlu1 %v676_v48, %s2030_s20  ;;  %592 = vrot.lane.b32.xlu0 %v588_v21, %s2029_s19 }
  0xaa   : > { %678 = vrot.lane.b32.xlu1 %v675_v22, %s2030_s20  ;;  %682 = vrot.lane.b32.xlu0 %v677_v23, %s2030_s20 }
  0xae   : > { %834 = vrot.lane.b32.xlu1 %v2028_v1, %s2035_s25  ;;  %645 = vrot.lane.b32.xlu0 %v642_v25, %s2036_s26 }
  0xb2   : > { %876 = vrot.lane.b32.xlu1 %v2164_v0, %s2032_s22  ;;  %700 = vperm.xlu0 %1991, %v435_v27  }
  0xb6   : > { %905 = vrot.lane.b32.xlu1 %v2171_v9, %s2029_s19  ;;  %816 = vrot.lane.b32.xlu0 %v2293_v40, %s2034_s24 }
  0xba   : > { %855 = vrot.lane.b32.xlu0 %v2174_v10, %s2033_s23 }
  0xbe   : > { %926 = vrot.lane.b32.xlu0 %v2184_v15, %s2031_s21  ;;  %v1481_v15 = vld [vmem:[#allocation2 + $0x38] sm:$0x7f] }
  0xfc   : > { %v554_v45 = vpop.permute.xlu1 %553  ;;  %v460_v47 = vpop.permute.xlu0 %459 }
 0x100   : > { %v464_v51 = vpop.permute.xlu1 %463  ;;  %v518_v53 = vpop.permute.xlu0 %517 }
 0x104   : > { %v522_v58 = vpop.permute.xlu1 %521  ;;  %v591_v61 = vpop.permute.xlu0 %590 }
 0x108   : > { %v558_v62 = vpop.permute.xlu1 %557  ;;  %v629_v63 = vpop.permute.xlu0 %628 }
 0x10c   : > { %v595_v2 = vpop.permute.xlu1 %594  ;;  %v462_v3 = vpop.permute.xlu0 %461 }
 0x10d   : > { %v466_v5 = vsel %vm465_vm11, %v460_v47, %v462_v3  ;;  %v467_v6 = vsel %vm465_vm11, %v462_v3, %v464_v51 }
 0x10e   : > { %470 = vst [vmem:[#allocation3] sm:$0x7] %v466_v5  ;;  %471 = vst [vmem:[#allocation3 + $0x8] sm:$0x7] %v467_v6 }
 0x110   : > { %v625_v7 = vpop.permute.xlu1 %624  ;;  %v520_v8 = vpop.permute.xlu0 %519 }
 0x111   : > { %v524_v11 = vsel %vm523_vm7, %v518_v53, %v520_v8  ;;  %v525_v12 = vsel %vm523_vm7, %v520_v8, %v522_v58 }
 0x112   : > { %528 = vst [vmem:[#allocation3 + $0x10] ss:$-12 sps:$4 sm:$0xc1] %v524_v11   ;;  %529 = vst [vmem:[#allocation3 + $0x18] ss:$-12 sps:$4 sm:$0xc1] %v525_v12  }
 0x114   : > { %v627_v16 = vpop.permute.xlu1 %626  ;;  %v556_v17 = vpop.permute.xlu0 %555 }
 0x115   : > { %v630_v48 = vsel %vm503_vm5, %v625_v7, %v627_v16  ;;  %v631_v19 = vsel %vm503_vm5, %v627_v16, %v629_v63  ;;  %v560_v20 = vsel %vm559_vm15, %v554_v45, %v556_v17  ;;  %v561_v21 = vsel %vm559_vm15, %v556_v17, %v558_v62 }
 0x116   : > { %634 = vst [vmem:[#allocation3 + $0x20] sm:$0x1c] %v630_v48  ;;  %635 = vst [vmem:[#allocation3 + $0x28] sm:$0x1c] %v631_v19 }
 0x117   : > { %564 = vst [vmem:[#allocation3 + $0x10] sm:$0xe] %v560_v20  ;;  %565 = vst [vmem:[#allocation3 + $0x18] sm:$0xe] %v561_v21 }
 0x118   : > { %v681_v22 = vpop.permute.xlu1 %680  ;;  %v593_v23 = vpop.permute.xlu0 %592 }
 0x119   : > { %v596_v24 = vsel %vm539_vm6, %v591_v61, %v593_v23  ;;  %v597_v25 = vsel %vm539_vm6, %v593_v23, %v595_v2  ;;  %v691_v58 = vld [vmem:[#allocation3 + $0x8] sm:$0xff]  ;;  %v690_v3 = vld [vmem:[#allocation3] sm:$0xff] }
 0x11a   : > { %600 = vst [vmem:[#allocation3 + $0x20] ss:$-12 sps:$4 sm:$0x83] %v596_v24   ;;  %601 = vst [vmem:[#allocation3 + $0x28] ss:$-12 sps:$4 sm:$0x83] %v597_v25  }
 0x11c   : > { %v679_v27 = vpop.permute.xlu1 %678  ;;  %v683_v47 = vpop.permute.xlu0 %682 }
 0x11d   : > { %v684_v51 = vsel %vm445_vm4, %v679_v27, %v681_v22  ;;  %v685_v45 = vsel %vm445_vm4, %v681_v22, %v683_v47 }
 0x11e   : > { %688 = vst [vmem:[#allocation3 + $0x30] sm:$0x7] %v684_v51  ;;  %689 = vst [vmem:[#allocation3 + $0x38] sm:$0x7] %v685_v45 }
 0x120   : > { %v646_v53 = vpop.permute.xlu0 %645 }
 0x121   : > { %v652_v62 = vsel %vm651_vm12, %v646_v53, %v2211_v41  ;;  %v693_v63 = vld [vmem:[#allocation3 + $0x18] sm:$0xff]  ;;  %v692_v61 = vld [vmem:[#allocation3 + $0x10] sm:$0xff]  ;;  %v695_v6 = vld [vmem:[#allocation3 + $0x28] sm:$0xff] }
 0x122   : > { %656 = vst [vmem:[#allocation3 + $0x20] sm:$0xe0] %v652_v62  ;;  %v1884_v2 = vpack.c.bf16 %v693_v63, %v691_v58  ;;  %v1886_v5 = vpack.c.bf16 %v692_v61, %v690_v3  ;;  %v434_v41 = vld [vmem:[%s2748_s2] sm:$0xff] }
 0x124   : > { %1885 = vmatprep.subr.bf16.mxu1 %v1884_v2 }
 0x125   : > { %1887 = vmatpush1.bf16.msra.mxu1 %v1886_v5  ;;  %v697_v7 = vld [vmem:[#allocation3 + $0x38] sm:$0x7]  ;;  %v696_v12 = vld [vmem:[#allocation3 + $0x30] sm:$0x7] }
 0x126   : > { %v1888_v8 = vpack.c.bf16 %v697_v7, %v695_v6 }
 0x128   : > { %1890 = vmatprep.subr.msk.bf16.mxu1 %vm1889_vm1, %v1888_v8 }
 0x129   : > { %v694_v11 = vld [vmem:[#allocation3 + $0x20] sm:$0xff] }
 0x12a   : > { %v1891_v16 = vpack.c.bf16 %v696_v12, %v694_v11 }
 0x12c   : > { %1893 = vmatpush1.bf16.msk.msra.mxu1 %vm1889_vm1, %v1891_v16  ;;  %vm1488_vm1 = vcmask 1040384  }
 0x12f   : > { %1874 = vmatmul.mubr.msk.f32.vlgmr.msra.gmra.mrb[0].mxu1 %vm703_vm2, %v434_v41  ;;  %vm1330_vm2 = vcmask 1043456  }
 0x130   : > { %1064 = vmatprep.mubr.f32.mxu1 %v2028_v1 }
 0x131   : > { %v701_v17 = vpop.permute.xlu0 %700 }
 0x202   : > { %v780_v48 = vpop.f32.mrb[0].mxu1 }
 0x203   : > { %v781_v19 = vadd.f32 %v780_v48, %v701_v17  ;;  %v782_v20 = vpop.f32.mrb[1].mxu1 }
 0x204   : > { %v783_v21 = vadd.f32 %v782_v20, %v701_v17 }
 0x205   : > { %v787_v22 = vmul.f32 0.044715, %v781_v19  ;;  %v785_v3 = vmul.f32 0.5, %v781_v19 }
 0x206   : > { %v788_v23 = vmul.f32 0.044715, %v783_v21  ;;  %v786_v2 = vmul.f32 0.5, %v783_v21 }
 0x207   : > { %v789_v24 = vmul.f32 %v787_v22, %v781_v19 }
 0x208   : > { %v790_v25 = vmul.f32 %v788_v23, %v783_v21  ;;  %v806_v23 = vld [vmem:[%s2751_s5] sm:$0xff] }
 0x209   : > { %v791_v27 = vmul.f32 %v789_v24, %v781_v19 }
 0x20a   : > { %v792_v47 = vmul.f32 %v790_v25, %v783_v21 }
 0x20b   : > { %v793_v51 = vadd.f32 %v791_v27, %v781_v19  ;;  %v420_v27 = vld [vmem:[%s366_s27] sm:$0xf] }
 0x20c   : > { %v794_v45 = vadd.f32 %v792_v47, %v783_v21  ;;  %v2364_v21 = vmul.f32 0.0, %v2189_v26  ;;  %v817_v47 = vpop.permute.xlu0 %816 }
 0x20d   : > { %v795_v53 = vmul.f32 0.7978846, %v793_v51  ;;  %v835_v51 = vpop.permute.xlu1 %834 }
 0x20e   : > { %v796_v58 = vmul.f32 0.7978846, %v794_v45 }
 0x20f   : > { %2004 = vtanh.f32 %v795_v53 }
 0x210   : > { %2006 = vtanh.f32 %v796_v58  ;;  %v856_v45 = vpop.permute.xlu0 %855 }
 0x211   : > { %v877_v53 = vpop.permute.xlu1 %876 }
 0x214   : > { %v927_v58 = vpop.permute.xlu0 %926 }
 0x219   : > { %v2005_v62 = vpop.eup %2004 }
 0x21a   : > { %v2007_v63 = vpop.eup %2006  ;;  %v799_v61 = vadd.f32 1.0, %v2005_v62  ;;  %v906_v62 = vpop.permute.xlu1 %905 }
 0x21b   : > { %v800_v5 = vadd.f32 1.0, %v2007_v63 }
 0x21c   : > { %v2322_v6 = vmul.f32 %v799_v61, %v785_v3 }
 0x21d   : > { %v2324_v7 = vmul.f32 %v800_v5, %v786_v2 }
 0x21e   : > { %836 = vrot.lane.b32.xlu0 %v2322_v6, %s2035_s25  ;;  %v850_v8 = vmul.f32 %v2322_v6, %v2181_v14  ;;  %v871_v11 = vmul.f32 %v2322_v6, %v2228_v54  ;;  %v811_v12 = vmul.f32 %v2322_v6, %v2157_v60  ;;  %v895_v16 = vmul.f32 %v2141_v44, %v2322_v6 }
 0x21f   : > { %838 = vrot.lane.b32.xlu1 %v2324_v7, %s2035_s25  ;;  %v812_v41 = vmul.f32 %v2130_v30, %v2324_v7  ;;  %v896_v17 = vmul.f32 %v2324_v7, %v2270_v4  ;;  %v851_v48 = vmul.f32 %v2137_v39, %v2324_v7  ;;  %v872_v19 = vmul.f32 %v2143_v46, %v2324_v7 }
 0x220   : > { %v916_v20 = vmul.f32 %v2176_v13, %v2322_v6  ;;  %v917_v22 = vmul.f32 %v2324_v7, %v2223_v52  ;;  %v956_v24 = vmul.f32 %v2324_v7, %v2263_v59  ;;  %v955_v25 = vmul.f32 %v2208_v38, %v2322_v6 }
 0x222   : > { %857 = vrot.lane.b32.xlu0 %v850_v8, %s2033_s23 }
 0x223   : > { %942 = vrot.lane.b32.xlu1 %v2324_v7, %s2036_s26 }
 0x226   : > { %878 = vrot.lane.b32.xlu0 %v871_v11, %s2032_s22 }
 0x227   : > { %818 = vrot.lane.b32.xlu1 %v811_v12, %s2034_s24 }
 0x22a   : > { %901 = vrot.lane.b32.xlu0 %v895_v16, %s2029_s19 }
 0x22b   : > { %820 = vrot.lane.b32.xlu1 %v812_v41, %s2034_s24 }
 0x22e   : > { %903 = vrot.lane.b32.xlu0 %v896_v17, %s2029_s19 }
 0x22f   : > { %859 = vrot.lane.b32.xlu1 %v851_v48, %s2033_s23 }
 0x232   : > { %944 = vrot.lane.b32.xlu0 %v2028_v1, %s2036_s26 }
 0x233   : > { %880 = vrot.lane.b32.xlu1 %v872_v19, %s2032_s22 }
 0x236   : > { %940 = vrot.lane.b32.xlu0 %v2322_v6, %s2036_s26 }
 0x237   : > { %922 = vrot.lane.b32.xlu1 %v916_v20, %s2031_s21 }
 0x23a   : > { %965 = vrot.lane.b32.xlu0 %v2364_v21, %s2030_s20 }
 0x23b   : > { %924 = vrot.lane.b32.xlu1 %v917_v22, %s2031_s21 }
 0x23e   : > { %993 = vperm.xlu0 %1991, %v806_v23  }
 0x23f   : > { %963 = vrot.lane.b32.xlu1 %v956_v24, %s2030_s20 }
 0x243   : > { %961 = vrot.lane.b32.xlu1 %v955_v25, %s2030_s20 }
 0x247   : > { %423 = vperm.xlu1 %1992, %v420_v27  }
 0x290   : > { %v837_v63 = vpop.permute.xlu0 %836 }
 0x291   : > { %v840_v3 = vsel %vm487_vm13, %v835_v51, %v837_v63  ;;  %v839_v61 = vpop.permute.xlu1 %838 }
 0x292   : > { %844 = vst [vmem:[#allocation3 + $0x10] sm:$0xff] %v840_v3  ;;  %v841_v2 = vsel %vm487_vm13, %v837_v63, %v839_v61 }
 0x293   : > { %845 = vst [vmem:[#allocation3 + $0x18] sm:$0xff] %v841_v2 }
 0x294   : > { %v858_v5 = vpop.permute.xlu0 %857 }
 0x295   : > { %v943_v8 = vpop.permute.xlu1 %942 }
 0x298   : > { %v879_v11 = vpop.permute.xlu0 %878 }
 0x299   : > { %v882_v12 = vsel %vm559_vm15, %v877_v53, %v879_v11  ;;  %v819_v16 = vpop.permute.xlu1 %818 }
 0x29a   : > { %886 = vst [vmem:[#allocation3 + $0x30] sm:$0xff] %v882_v12  ;;  %v822_v17 = vsel %vm465_vm11, %v817_v47, %v819_v16 }
 0x29b   : > { %v1896_v23 = vpack.c.bf16 %v840_v3, %v822_v17  ;;  %v861_v3 = vsel %vm523_vm7, %v856_v45, %v858_v5 }
 0x29c   : > { %v902_v41 = vpop.permute.xlu0 %901 }
 0x29d   : > { %v821_v48 = vpop.permute.xlu1 %820 }
 0x29e   : > { %v823_v19 = vsel %vm465_vm11, %v819_v16, %v821_v48 }
 0x29f   : > { %v1894_v20 = vpack.c.bf16 %v841_v2, %v823_v19 }
 0x2a0   : > { %v904_v22 = vpop.permute.xlu0 %903 }
 0x2a1   : > { %v907_v24 = vsel %vm539_vm6, %v902_v41, %v904_v22  ;;  %v908_v25 = vsel %vm539_vm6, %v904_v22, %v906_v62  ;;  %v860_v27 = vpop.permute.xlu1 %859  ;;  %1895 = vmatprep.subr.bf16.mxu1 %v1894_v20  ;;  %v1900_v62 = vpack.c.bf16 %v882_v12, %v861_v3 }
 0x2a2   : > { %911 = vst [vmem:[#allocation3 + $0x50] sm:$0xff] %v907_v24  ;;  %912 = vst [vmem:[#allocation3 + $0x58] sm:$0xff] %v908_v25  ;;  %1897 = vmatpush1.bf16.msra.mxu1 %v1896_v23  ;;  %v862_v47 = vsel %vm523_vm7, %v858_v5, %v860_v27  ;;  %v1902_v48 = vpack.c.bf16 %v908_v25, %v2324_v7  ;;  %v1904_v19 = vpack.c.bf16 %v907_v24, %v2322_v6  ;;  %v805_v6 = vld [vmem:[%s2750_s4] sm:$0xff] }
 0x2a3   : > { %v1139_v25 = vld [vmem:[#allocation2 + $0x20] sm:$0x7f]  ;;  %v1149_v27 = vrot.slane %v2028_v1, 1 }
 0x2a4   : > { %v945_v51 = vpop.permute.xlu0 %944 }
 0x2a5   : > { %v947_v53 = vsel %vm651_vm12, %v943_v8, %v945_v51  ;;  %v881_v63 = vpop.permute.xlu1 %880 }
 0x2a6   : > { %951 = vst [vmem:[#allocation3 + $0x78] sm:$0xff] %v947_v53  ;;  %v883_v61 = vsel %vm559_vm15, %v879_v11, %v881_v63 }
 0x2a7   : > { %887 = vst [vmem:[#allocation3 + $0x38] sm:$0xff] %v883_v61  ;;  %v1898_v2 = vpack.c.bf16 %v883_v61, %v862_v47 }
 0x2a8   : > { %v941_v16 = vpop.permute.xlu0 %940 }
 0x2a9   : > { %v946_v41 = vsel %vm651_vm12, %v941_v16, %v943_v8  ;;  %v923_v17 = vpop.permute.xlu1 %922  ;;  %1899 = vmatprep.subr.bf16.mxu1 %v1898_v2  ;;  %v1152_v16 = vrot.slane %v1139_v25, 1 }
 0x2aa   : > { %950 = vst [vmem:[#allocation3 + $0x70] sm:$0xff] %v946_v41  ;;  %1901 = vmatpush1.bf16.msra.mxu1 %v1900_v62 }
 0x2ab   : > { %1903 = vmatprep.subr.bf16.mxu1 %v1902_v48 }
 0x2ac   : > { %v966_v12 = vpop.permute.xlu0 %965 }
 0x2ad   : > { %v925_v20 = vpop.permute.xlu1 %924 }
 0x2ae   : > { %v928_v11 = vsel %vm503_vm5, %v923_v17, %v925_v20  ;;  %v929_v45 = vsel %vm503_vm5, %v925_v20, %v927_v58  ;;  %1905 = vmatpush1.bf16.msra.mxu1 %v1904_v19  ;;  %v1153_v19 = vsel %vm1148_vm0, %v1149_v27, %v1152_v16 }
 0x2af   : > { %v1906_v5 = vpack.c.bf16 %v947_v53, %v929_v45  ;;  %v1908_v22 = vpack.c.bf16 %v946_v41, %v928_v11  ;;  %v1097_v41 = vld [vmem:[#allocation2 + $0x20] sm:$0x7f]  ;;  %v1993_v11 = vpack.i.bf16 %v1153_v19, %v1149_v27 }
 0x2b0   : > { %v1103_v48 = vmul.f32 %v2132_v31, %v1097_v41 }
 0x2b1   : > { %v964_v23 = vpop.permute.xlu1 %963  ;;  %1907 = vmatprep.subr.bf16.mxu1 %v1906_v5 }
 0x2b2   : > { %v968_v8 = vsel %vm445_vm4, %v964_v23, %v966_v12  ;;  %1909 = vmatpush1.bf16.msra.mxu1 %v1908_v22 }
 0x2b3   : > { %1016 = vmatprep.subr.mxu1 %v968_v8 }
 0x2b5   : > { %v962_v7 = vpop.permute.xlu1 %961 }
 0x2b6   : > { %v967_v24 = vsel %vm445_vm4, %v962_v7, %v964_v23 }
 0x2b7   : > { %1017 = vmatpush1.msra.mxu1 %v967_v24 }
 0x2b8   : > { %1875 = vmatmul.mubr.msk.f32.vlgmr.msra.gmra.mrb[2].mxu1 %vm996_vm3, %v805_v6 }
 0x2b9   : > { %1777 = vmatprep.mubr.f32.mxu1 %v2028_v1 }
 0x2bd   : > { %v994_v36 = vpop.permute.xlu0 %993 }
 0x2c6   : > { %v424_v58 = vpop.permute.xlu1 %423 }
 0x2c7   : > { %426 = vst [vmem:[#allocation2 + $0x28] sm:$0xf] %v424_v58  ;;  %427 = vst [vmem:[#allocation2 + $0x30] sm:$0xf] %v424_v58 }
 0x2ce   : > { %v2407_v51 = vld [vmem:[#allocation2 + $0x28] sm:$0x7f]  ;;  %v2409_v53 = vld [vmem:[#allocation2 + $0x30] sm:$0x7f] }
 0x2cf   : > { %v1099_v63 = vld [vmem:[#allocation2 + $0x30] sm:$0x7f]  ;;  %v1333_v47 = vrot.slane %v2407_v51, 4  ;;  %v1335_v61 = vrot.slane %v2409_v53, 4  ;;  %v1098_v2 = vld [vmem:[#allocation2 + $0x28] sm:$0x7f] }
 0x2d0   : > { %v1105_v3 = vmul.f32 %v2130_v30, %v1099_v63  ;;  %v1104_v62 = vmul.f32 %v1098_v2, %v2157_v60  ;;  %v2421_v17 = vld [vmem:[#allocation2 + $0x28] sm:$0x7f]  ;;  %v2429_v45 = vld [vmem:[#allocation2 + $0x30] sm:$0x7f] }
 0x2d1   : > { %1347 = vst [vmem:[#allocation3 + $0x90] sm:$0x7] %v1333_v47  ;;  %1348 = vst [vmem:[#allocation3 + $0x98] sm:$0x7] %v1335_v61  ;;  %v1154_v20 = vrot.slane %v2421_v17, 1  ;;  %v1156_v31 = vrot.slane %v2429_v45, 1 }
 0x2d2   : > { %1122 = vrot.lane.b32.xlu1 %v1105_v3, %s2034_s24  ;;  %1120 = vrot.lane.b32.xlu0 %v1104_v62, %s2034_s24  ;;  %v1198_v5 = vld [vmem:[#allocation2 + $0x28] sm:$0x7f]  ;;  %v1199_v12 = vld [vmem:[#allocation2 + $0x30] sm:$0x7f] }
 0x2d3   : > { %v2437_v22 = vmul.f32 %v1198_v5, %v2181_v14  ;;  %v2445_v23 = vmul.f32 %v2137_v39, %v1199_v12  ;;  %v1263_v7 = vld [vmem:[#allocation2 + $0x30] sm:$0x7f]  ;;  %v1262_v6 = vld [vmem:[#allocation2 + $0x28] sm:$0x7f] }
 0x2d4   : > { %v2460_v24 = vmul.f32 %v2143_v46, %v1263_v7  ;;  %v2463_v58 = vmul.f32 %v1262_v6, %v2228_v54  ;;  %v1352_v32 = vld [vmem:[#allocation2 + $0x28] sm:$0x7f]  ;;  %v1416_v9 = vld [vmem:[#allocation2 + $0x30] sm:$0x7f] }
 0x2d5   : > { %v2760_v8 = vrot.slane %v2445_v23, 2  ;;  %v2500_v33 = vmul.f32 %v2141_v44, %v1352_v32 }
 0x2d6   : > { %1118 = vrot.lane.b32.xlu1 %v1103_v48, %s2034_s24  ;;  %1112 = vrot.lane.b32.xlu0 %v2293_v40, %s2034_s24  ;;  %v1218_v40 = vrot.slane %v2437_v22, 2  ;;  %v2759_v10 = vrot.slane %v2460_v24, 3 }
 0x2da   : > { %1172 = vrot.lane.b32.xlu1 %v1154_v20, %s2035_s25  ;;  %1994 = vrot.lane.b32.xlu0 %v1993_v11, %s2035_s25 }
 0x2de   : > { %1170 = vrot.lane.b32.xlu1 %v1152_v16, %s2035_s25  ;;  %1174 = vrot.lane.b32.xlu0 %v1156_v31, %s2035_s25 }
 0x2e2   : > { %1236 = vrot.lane.b32.xlu1 %v1218_v40, %s2033_s23  ;;  %1222 = vrot.lane.b32.xlu0 %v1213_v28, %s2033_s23  ;;  %v1282_v28 = vrot.slane %v2463_v58, 3 }
 0x2e6   : > { %1228 = vrot.lane.b32.xlu1 %v2235_v55, %s2033_s23  ;;  %1238 = vrot.lane.b32.xlu0 %v2760_v8, %s2033_s23  ;;  %v1353_v55 = vld [vmem:[#allocation2 + $0x30] sm:$0x7f] }
 0x2e7   : > { %v2485_v0 = vmul.f32 %v1353_v55, %v2270_v4 }
 0x2ea   : > { %1286 = vrot.lane.b32.xlu1 %v1277_v18, %s2032_s22  ;;  %1234 = vrot.lane.b32.xlu0 %v1216_v42, %s2033_s23  ;;  %v2758_v18 = vrot.slane %v2485_v0, 5  ;;  %v2509_v42 = vmul.f32 %v1416_v9, %v2223_v52 }
 0x2ec   : > { %v2757_v35 = vrot.slane %v2509_v42, 6 }
 0x2ee   : > { %1302 = vrot.lane.b32.xlu1 %v2759_v10, %s2032_s22  ;;  %1300 = vrot.lane.b32.xlu0 %v1282_v28, %s2032_s22 }
 0x2f2   : > { %1298 = vrot.lane.b32.xlu1 %v1280_v43, %s2032_s22  ;;  %1292 = vrot.lane.b32.xlu0 %v2242_v56, %s2032_s22  ;;  %v1496_v43 = vrot.slane %v1481_v15, 7 }
 0x2f6   : > { %1380 = vrot.lane.b32.xlu1 %v1369_v34, %s2029_s19  ;;  %1386 = vrot.lane.b32.xlu0 %v2251_v29, %s2029_s19  ;;  %v1370_v34 = vrot.slane %v2500_v33, 5 }
 0x2fa   : > { %1390 = vrot.lane.b32.xlu1 %v2758_v18, %s2029_s19  ;;  %1392 = vrot.lane.b32.xlu0 %v1374_v49, %s2029_s19 }
 0x2fe   : > { %1450 = vrot.lane.b32.xlu1 %v2258_v57, %s2031_s21  ;;  %1444 = vrot.lane.b32.xlu0 %v1433_v37, %s2031_s21  ;;  %v1491_v37 = vrot.slane %v2028_v1, 7 }
 0x300   : > { %v1497_v49 = vsel %vm1488_vm1, %v1491_v37, %v1496_v43 }
 0x301   : > { %v1998_v56 = vpack.i.bf16 %v1497_v49, %v1491_v37 }
 0x302   : > { %1456 = vrot.lane.b32.xlu1 %v1438_v50, %s2031_s21  ;;  %1388 = vrot.lane.b32.xlu0 %v1370_v34, %s2029_s19 }
 0x306   : > { %1454 = vrot.lane.b32.xlu0 %v2757_v35, %s2031_s21  ;;  %1999 = vrot.lane.b32.xlu1 %v1998_v56, %s2036_s26 }
 0x344   : > { %v1123_v50 = vpop.permute.xlu1 %1122  ;;  %v1121_v29 = vpop.permute.xlu0 %1120 }
 0x345   : > { %v1127_v57 = vsel %vm465_vm11, %v1121_v29, %v1123_v50 }
 0x346   : > { %1135 = vst [vmem:[#allocation3 + $0x18] sm:$0x7f] %v1127_v57 }
 0x348   : > { %v1119_v25 = vpop.permute.xlu1 %1118  ;;  %v2526_v63 = vpop.permute.xlu0 %1112 }
 0x349   : > { %v1126_v27 = vsel %vm465_vm11, %v1119_v25, %v1121_v29 }
 0x34a   : > { %1134 = vst [vmem:[#allocation3 + $0x10] sm:$0x7f] %v1126_v27 }
 0x34c   : > { %v1173_v3 = vpop.permute.xlu1 %1172  ;;  %v2528_v1 = vpop.permute.xlu0 %1994 }
 0x350   : > { %v1171_v2 = vpop.permute.xlu1 %1170  ;;  %v1175_v62 = vpop.permute.xlu0 %1174 }
 0x351   : > { %v1180_v16 = vsel %vm487_vm13, %v1171_v2, %v1173_v3  ;;  %v1181_v41 = vsel %vm487_vm13, %v1173_v3, %v1175_v62 }
 0x352   : > { %1192 = vst [vmem:[#allocation3 + $0x30] sm:$0x3f] %v1180_v16  ;;  %1193 = vst [vmem:[#allocation3 + $0x38] sm:$0x3f] %v1181_v41 }
 0x354   : > { %v1237_v48 = vpop.permute.xlu1 %1236  ;;  %v2532_v19 = vpop.permute.xlu0 %1222 }
 0x358   : > { %v2534_v11 = vpop.permute.xlu1 %1228  ;;  %v1239_v5 = vpop.permute.xlu0 %1238 }
 0x359   : > { %v1245_v12 = vsel %vm523_vm7, %v1237_v48, %v1239_v5 }
 0x35a   : > { %1257 = vst [vmem:[#allocation3 + $0x58] sm:$0x1f] %v1245_v12 }
 0x35c   : > { %v2537_v7 = vpop.permute.xlu1 %1286  ;;  %v1235_v6 = vpop.permute.xlu0 %1234 }
 0x35d   : > { %v1244_v55 = vsel %vm523_vm7, %v1235_v6, %v1237_v48 }
 0x35e   : > { %1256 = vst [vmem:[#allocation3 + $0x50] sm:$0x1f] %v1244_v55 }
 0x360   : > { %v1303_v32 = vpop.permute.xlu1 %1302  ;;  %v1301_v9 = vpop.permute.xlu0 %1300 }
 0x361   : > { %v1309_v15 = vsel %vm559_vm15, %v1301_v9, %v1303_v32 }
 0x362   : > { %1321 = vst [vmem:[#allocation3 + $0x78] sm:$0xf] %v1309_v15 }
 0x364   : > { %v1299_v37 = vpop.permute.xlu1 %1298  ;;  %v2542_v49 = vpop.permute.xlu0 %1292 }
 0x365   : > { %v1308_v43 = vsel %vm559_vm15, %v1299_v37, %v1301_v9 }
 0x366   : > { %1320 = vst [vmem:[#allocation3 + $0x70] sm:$0xf] %v1308_v43 }
 0x368   : > { %v2544_v56 = vpop.permute.xlu1 %1380  ;;  %v2546_v50 = vpop.permute.xlu0 %1386 }
 0x36c   : > { %v1391_v29 = vpop.permute.xlu1 %1390  ;;  %v1393_v57 = vpop.permute.xlu0 %1392 }
 0x36d   : > { %v1399_v25 = vsel %vm539_vm6, %v1391_v29, %v1393_v57 }
 0x36e   : > { %1411 = vst [vmem:[#allocation3 + $0xb8] sm:$0x3] %v1399_v25 }
 0x370   : > { %v2549_v27 = vpop.permute.xlu0 %1444  ;;  %v2551_v3 = vpop.permute.xlu1 %1450 }
 0x374   : > { %v1389_v2 = vpop.permute.xlu0 %1388  ;;  %v1457_v62 = vpop.permute.xlu1 %1456 }
 0x375   : > { %v1398_v16 = vsel %vm539_vm6, %v1389_v2, %v1391_v29 }
 0x376   : > { %1410 = vst [vmem:[#allocation3 + $0xb0] sm:$0x3] %v1398_v16 }
 0x378   : > { %v2554_v41 = vpop.permute.xlu0 %1454 }
 0x379   : > { %v1463_v48 = vsel %vm503_vm5, %v2554_v41, %v1457_v62 }
 0x37a   : > { %1475 = vst [vmem:[#allocation3 + $0xd8] sm:$0x1] %v1463_v48 }
 0x38b   : > { %v1066_v5 = vpop.f32.mrb[2].mxu1 }
 0x38c   : > { %v1067_v12 = vadd.f32 %v1066_v5, %v994_v36  ;;  %v1068_v6 = vpop.f32.mrb[3].mxu1 }
 0x38d   : > { %v1069_v55 = vadd.f32 %v1068_v6, %v994_v36 }
 0x38e   : > { %v1073_v32 = vmul.f32 0.044715, %v1067_v12  ;;  %v1071_v62 = vmul.f32 0.5, %v1067_v12 }
 0x38f   : > { %v1074_v9 = vmul.f32 0.044715, %v1069_v55  ;;  %v1072_v10 = vmul.f32 0.5, %v1069_v55 }
 0x390   : > { %v1075_v15 = vmul.f32 %v1073_v32, %v1067_v12 }
 0x391   : > { %v1076_v37 = vmul.f32 %v1074_v9, %v1069_v55 }
 0x392   : > { %v1077_v43 = vmul.f32 %v1075_v15, %v1067_v12 }
 0x393   : > { %v1078_v57 = vmul.f32 %v1076_v37, %v1069_v55 }
 0x394   : > { %v1079_v25 = vadd.f32 %v1077_v43, %v1067_v12 }
 0x395   : > { %v1080_v29 = vadd.f32 %v1078_v57, %v1069_v55 }
 0x396   : > { %v1081_v2 = vmul.f32 0.7978846, %v1079_v25 }
 0x397   : > { %v1082_v16 = vmul.f32 0.7978846, %v1080_v29  ;;  %v1415_v29 = vld [vmem:[#allocation2 + $0x28] sm:$0x7f] }
 0x398   : > { %2008 = vtanh.f32 %v1081_v2 }
 0x399   : > { %2010 = vtanh.f32 %v1082_v16 }
 0x3a2   : > { %v2009_v35 = vpop.eup %2008 }
 0x3a3   : > { %v2011_v18 = vpop.eup %2010  ;;  %v1085_v48 = vadd.f32 1.0, %v2009_v35 }
 0x3a4   : > { %v1086_v5 = vadd.f32 1.0, %v2011_v18 }
 0x3a5   : > { %v2558_v8 = vmul.f32 %v1085_v48, %v1071_v62 }
 0x3a6   : > { %v2560_v36 = vmul.f32 %v1086_v5, %v1072_v10 }
 0x3a7   : > { %v1101_v6 = vmul.f32 %v2558_v8, %v2157_v60  ;;  %v1150_v9 = vrot.slane %v2558_v8, 1  ;;  %v1201_v60 = vmul.f32 %v2558_v8, %v2181_v14  ;;  %v1331_v18 = vrot.slane %v2558_v8, 4 }
 0x3a8   : > { %v1102_v32 = vmul.f32 %v2130_v30, %v2560_v36  ;;  %v1151_v35 = vrot.slane %v2560_v36, 1  ;;  %v1490_v10 = vrot.slane %v2560_v36, 7  ;;  %v1332_v30 = vrot.slane %v2560_v36, 4 }
 0x3a9   : > { %1114 = vrot.lane.b32.xlu0 %v1101_v6, %s2034_s24  ;;  %v1155_v12 = vsel %vm1148_vm0, %v1150_v9, %v1154_v20  ;;  %1343 = vst [vmem:[#allocation3 + $0x70] sm:$0xf0] %v1331_v18  ;;  %v2588_v14 = vsel %vm1330_vm2, %v1331_v18, %v1333_v47  ;;  %v1355_v15 = vmul.f32 %v2141_v44, %v2558_v8  ;;  %v1214_v20 = vrot.slane %v1201_v60, 2  ;;  %v1479_v6 = vld [vmem:[#allocation2 + $0x28] sm:$0x7f] }
 0x3aa   : > { %1116 = vrot.lane.b32.xlu1 %v1102_v32, %s2034_s24  ;;  %1344 = vst [vmem:[#allocation3 + $0x78] sm:$0xf0] %v1332_v30  ;;  %v2584_v55 = vsel %vm1330_vm2, %v1332_v30, %v1335_v61  ;;  %v1157_v17 = vsel %vm1148_vm0, %v1151_v35, %v1156_v31  ;;  %v1265_v37 = vmul.f32 %v2558_v8, %v2228_v54  ;;  %v2764_v32 = vrot.slane %v2509_v42, 6  ;;  %v1526_v60 = vld [vmem:[#allocation2 + $0x30] sm:$0x7f] }
 0x3ab   : > { %v1367_v53 = vrot.slane %v1355_v15, 5  ;;  %v1202_v51 = vmul.f32 %v2137_v39, %v2560_v36  ;;  %v1418_v44 = vmul.f32 %v2176_v13, %v2558_v8  ;;  %v1266_v54 = vmul.f32 %v2143_v46, %v2560_v36  ;;  %v1525_v18 = vld [vmem:[#allocation2 + $0x28] sm:$0x7f] }
 0x3ac   : > { %v1278_v47 = vrot.slane %v1265_v37, 3  ;;  %v1419_v39 = vmul.f32 %v2560_v36, %v2223_v52  ;;  %v1219_v43 = vsel %vm1212_vm9, %v1214_v20, %v1218_v40  ;;  %v1356_v46 = vmul.f32 %v2560_v36, %v2270_v4 }
 0x3ad   : > { %1160 = vrot.lane.b32.xlu0 %v1150_v9, %s2035_s25  ;;  %v1215_v61 = vrot.slane %v1202_v51, 2  ;;  %v1431_v45 = vrot.slane %v1418_v44, 6  ;;  %v1279_v31 = vrot.slane %v1266_v54, 3  ;;  %v1371_v22 = vsel %vm707_vm8, %v1367_v53, %v1370_v34 }
 0x3ae   : > { %1162 = vrot.lane.b32.xlu1 %v1151_v35, %s2035_s25  ;;  %v1283_v57 = vsel %vm1276_vm10, %v1278_v47, %v1282_v28  ;;  %v1432_v25 = vrot.slane %v1419_v39, 6  ;;  %v1368_v52 = vrot.slane %v1356_v46, 5  ;;  %v1421_v4 = vmul.f32 %v2176_v13, %v1415_v29 }
 0x3af   : > { %v2761_v40 = vrot.slane %v2445_v23, 2  ;;  %v2762_v28 = vrot.slane %v2460_v24, 3  ;;  %v1489_v13 = vrot.slane %v2558_v8, 7  ;;  %v1480_v23 = vld [vmem:[#allocation2 + $0x30] sm:$0x7f]  ;;  %v2763_v34 = vrot.slane %v2485_v0, 5 }
 0x3b0   : > { %v1434_v16 = vrot.slane %v1421_v4, 6  ;;  %v1529_v62 = vmul.f32 %v2560_v36, %v2263_v59  ;;  %v1494_v48 = vrot.slane %v1480_v23, 7  ;;  %v1437_v9 = vsel %vm1430_vm14, %v1432_v25, %v2764_v32 }
 0x3b1   : > { %1500 = vrot.lane.b32.xlu0 %v1490_v10, %s2036_s26  ;;  %v1221_v58 = vsel %vm1212_vm9, %v1215_v61, %v2761_v40  ;;  %v1285_v2 = vsel %vm1276_vm10, %v1279_v31, %v2762_v28  ;;  %v1373_v24 = vsel %vm707_vm8, %v1368_v52, %v2763_v34  ;;  %v1492_v0 = vrot.slane %v1479_v6, 7 }
 0x3b2   : > { %1166 = vrot.lane.b32.xlu1 %v1155_v12, %s2035_s25  ;;  %v1435_v33 = vsel %vm1430_vm14, %v1431_v45, %v1434_v16  ;;  %v1495_v5 = vsel %vm1488_vm1, %v1490_v10, %v1494_v48  ;;  %v1528_v35 = vmul.f32 %v2208_v38, %v2558_v8  ;;  %v1527_v10 = vld [vmem:[#allocation2 + $0x38] sm:$0x7f]  ;;  %v1532_v42 = vmul.f32 %v1526_v60, %v2263_v59  ;;  %v1093_v12 = vld [vmem:[%s2753_s7] sm:$0xff]  ;;  %v2677_v59 = vpop.permute.xlu1 %1999 }
 0x3b3   : > { %v1493_v36 = vsel %vm1488_vm1, %v1489_v13, %v1492_v0  ;;  %v1533_v30 = vmul.f32 %v2189_v26, %v1527_v10  ;;  %vm1603_vm8 = vcmask 56320   ;;  %v1531_v8 = vmul.f32 %v2208_v38, %v1525_v18  ;;  %v1703_v26 = vld [vmem:[%s2755_s9] sm:$0x7] }
 0x3b4   : > { %v1996_v37 = vunpack.i.l.bf16 %v2528_v1  ;;  %v1997_v54 = vunpack.i.h.bf16 %v2528_v1 }
 0x3b5   : > { %1168 = vrot.lane.b32.xlu0 %v1157_v17, %s2035_s25 }
 0x3b6   : > { %1224 = vrot.lane.b32.xlu1 %v1214_v20, %s2033_s23 }
 0x3b9   : > { %1376 = vrot.lane.b32.xlu0 %v1367_v53, %s2029_s19 }
 0x3ba   : > { %1288 = vrot.lane.b32.xlu1 %v1278_v47, %s2032_s22 }
 0x3bd   : > { %1226 = vrot.lane.b32.xlu0 %v1215_v61, %s2033_s23  ;;  %v2001_v61 = vunpack.i.l.bf16 %v2677_v59 }
 0x3be   : > { %1440 = vrot.lane.b32.xlu1 %v1431_v45, %s2031_s21 }
 0x3c1   : > { %1290 = vrot.lane.b32.xlu0 %v1279_v31, %s2032_s22 }
 0x3c2   : > { %1230 = vrot.lane.b32.xlu1 %v1219_v43, %s2033_s23 }
 0x3c5   : > { %1294 = vrot.lane.b32.xlu0 %v1283_v57, %s2032_s22 }
 0x3c6   : > { %1442 = vrot.lane.b32.xlu1 %v1432_v25, %s2031_s21 }
 0x3c9   : > { %1378 = vrot.lane.b32.xlu0 %v1368_v52, %s2029_s19 }
 0x3ca   : > { %1382 = vrot.lane.b32.xlu1 %v1371_v22, %s2029_s19 }
 0x3cd   : > { %1232 = vrot.lane.b32.xlu0 %v1221_v58, %s2033_s23 }
 0x3ce   : > { %1296 = vrot.lane.b32.xlu1 %v1285_v2, %s2032_s22 }
 0x3d1   : > { %1446 = vrot.lane.b32.xlu0 %v1435_v33, %s2031_s21 }
 0x3d2   : > { %1452 = vrot.lane.b32.xlu1 %v1434_v16, %s2031_s21 }
 0x3d5   : > { %1498 = vrot.lane.b32.xlu0 %v1489_v13, %s2036_s26 }
 0x3d6   : > { %1384 = vrot.lane.b32.xlu1 %v1373_v24, %s2029_s19 }
 0x3d9   : > { %1542 = vrot.lane.b32.xlu0 %v1529_v62, %s2030_s20 }
 0x3da   : > { %1506 = vrot.lane.b32.xlu1 %v1495_v5, %s2036_s26 }
 0x3dd   : > { %1448 = vrot.lane.b32.xlu0 %v1437_v9, %s2031_s21 }
 0x3de   : > { %1544 = vrot.lane.b32.xlu1 %v2364_v21, %s2030_s20  ;;  %v1092_v21 = vld [vmem:[%s2752_s6 + $0x8] sm:$0xff] }
 0x3df   : > { %1878 = vmatprep.mubr.msk.f32.mxu0 %vm1603_vm8, %v1092_v21  ;;  %v1579_v21 = vld [vmem:[#allocation3 + $0x78] sm:$0xff] }
 0x3e1   : > { %1504 = vrot.lane.b32.xlu0 %v1493_v36, %s2036_s26 }
 0x3e2   : > { %1540 = vrot.lane.b32.xlu1 %v1528_v35, %s2030_s20 }
 0x3e5   : > { %1548 = vrot.lane.b32.xlu0 %v1532_v42, %s2030_s20 }
 0x3e6   : > { %1550 = vrot.lane.b32.xlu1 %v1533_v30, %s2030_s20 }
 0x3e9   : > { %1546 = vrot.lane.b32.xlu0 %v1531_v8, %s2030_s20 }
 0x3ea   : > { %1600 = vperm.xlu1 %1992, %v1093_v12  }
 0x3ed   : > { %1706 = vperm.xlu0 %1991, %v1703_v26  }
 0x41b   : > { %v1115_v15 = vpop.permute.xlu0 %1114 }
 0x41c   : > { %v1124_v17 = vsel %vm465_vm11, %v2526_v63, %v1115_v15  ;;  %v1117_v20 = vpop.permute.xlu1 %1116 }
 0x41d   : > { %1132 = vst [vmem:[#allocation3] sm:$0xff] %v1124_v17  ;;  %v1125_v38 = vsel %vm465_vm11, %v1115_v15, %v1117_v20  ;;  %v1578_v20 = vld [vmem:[#allocation3 + $0x70] sm:$0xff] }
 0x41e   : > { %1133 = vst [vmem:[#allocation3 + $0x8] sm:$0xff] %v1125_v38 }
 0x41f   : > { %v1161_v53 = vpop.permute.xlu0 %1160 }
 0x420   : > { %v1176_v51 = vsel %vm487_vm13, %v1996_v37, %v1161_v53  ;;  %v1163_v47 = vpop.permute.xlu1 %1162 }
 0x421   : > { %1188 = vst [vmem:[#allocation3 + $0x10] sm:$0x80] %v1176_v51  ;;  %v1177_v44 = vsel %vm487_vm13, %v1161_v53, %v1163_v47 }
 0x422   : > { %1189 = vst [vmem:[#allocation3 + $0x18] sm:$0x80] %v1177_v44 }
 0x423   : > { %v2687_v63 = vpop.permute.xlu0 %1500 }
 0x424   : > { %v1511_v45 = vsel %vm651_vm12, %v2687_v63, %v2001_v61  ;;  %v1167_v31 = vpop.permute.xlu1 %1166 }
 0x425   : > { %1519 = vst [vmem:[#allocation3 + $0xd8] sm:$0xfe] %v1511_v45  ;;  %v1178_v39 = vsel %vm487_vm13, %v1997_v54, %v1167_v31 }
 0x426   : > { %1190 = vst [vmem:[#allocation3 + $0x20] sm:$0xff] %v1178_v39 }
 0x427   : > { %v1169_v43 = vpop.permute.xlu0 %1168 }
 0x428   : > { %v1179_v46 = vsel %vm487_vm13, %v1167_v31, %v1169_v43  ;;  %v1225_v57 = vpop.permute.xlu1 %1224  ;;  %v1566_v25 = vld [vmem:[#allocation3 + $0x10] sm:$0xff] }
 0x429   : > { %1191 = vst [vmem:[#allocation3 + $0x28] sm:$0xff] %v1179_v46  ;;  %v1240_v52 = vsel %vm523_vm7, %v2532_v19, %v1225_v57  ;;  %v1567_v1 = vld [vmem:[#allocation3 + $0x18] sm:$0xff]  ;;  %v1912_v4 = vpack.c.bf16 %v1566_v25, %v1124_v17 }
 0x42a   : > { %1252 = vst [vmem:[#allocation3 + $0x30] sm:$0xc0] %v1240_v52  ;;  %v1910_v29 = vpack.c.bf16 %v1567_v1, %v1125_v38 }
 0x42b   : > { %v1377_v22 = vpop.permute.xlu0 %1376 }
 0x42c   : > { %v1289_v40 = vpop.permute.xlu1 %1288  ;;  %1911 = vmatprep.subr.bf16.mxu0 %v1910_v29 }
 0x42d   : > { %v1304_v58 = vsel %vm559_vm15, %v2537_v7, %v1289_v40  ;;  %1913 = vmatpush1.bf16.msra.mxu0 %v1912_v4 }
 0x42e   : > { %1316 = vst [vmem:[#allocation3 + $0x50] sm:$0xe0] %v1304_v58 }
 0x42f   : > { %v1227_v28 = vpop.permute.xlu0 %1226 }
 0x430   : > { %v1241_v2 = vsel %vm523_vm7, %v1225_v57, %v1227_v28  ;;  %v1441_v16 = vpop.permute.xlu1 %1440 }
 0x431   : > { %1253 = vst [vmem:[#allocation3 + $0x38] sm:$0xc0] %v1241_v2  ;;  %v1570_v24 = vld [vmem:[#allocation3 + $0x30] sm:$0xff] }
 0x432   : > { %v1916_v9 = vpack.c.bf16 %v1570_v24, %v1178_v39  ;;  %v2002_v39 = vunpack.i.h.bf16 %v2677_v59 }
 0x433   : > { %v1291_v33 = vpop.permute.xlu0 %1290 }
 0x434   : > { %v1305_v19 = vsel %vm559_vm15, %v1289_v40, %v1291_v33  ;;  %v1231_v13 = vpop.permute.xlu1 %1230 }
 0x435   : > { %1317 = vst [vmem:[#allocation3 + $0x58] sm:$0xe0] %v1305_v19  ;;  %v1242_v23 = vsel %vm523_vm7, %v2534_v11, %v1231_v13  ;;  %v1574_v60 = vld [vmem:[#allocation3 + $0x50] sm:$0xff] }
 0x436   : > { %v1920_v8 = vpack.c.bf16 %v1574_v60, %v1242_v23 }
 0x437   : > { %v1295_v34 = vpop.permute.xlu0 %1294 }
 0x438   : > { %v1306_v7 = vsel %vm559_vm15, %v2542_v49, %v1295_v34  ;;  %v1443_v62 = vpop.permute.xlu1 %1442  ;;  %v1571_v48 = vld [vmem:[#allocation3 + $0x38] sm:$0xff] }
 0x439   : > { %v1458_v5 = vsel %vm503_vm5, %v1441_v16, %v1443_v62  ;;  %v1459_v6 = vsel %vm503_vm5, %v1443_v62, %v2549_v27  ;;  %v1914_v32 = vpack.c.bf16 %v1571_v48, %v1179_v46  ;;  %v1924_v38 = vpack.c.bf16 %v1578_v20, %v1306_v7  ;;  %v1091_v7 = vld [vmem:[%s2752_s6] sm:$0xff] }
 0x43a   : > { %1470 = vst [vmem:[#allocation3 + $0xb0] sm:$0xfc] %v1458_v5  ;;  %1471 = vst [vmem:[#allocation3 + $0xb8] sm:$0xfc] %v1459_v6  ;;  %v1702_v20 = vld [vmem:[%s2754_s8] sm:$0x7] }
 0x43b   : > { %v1379_v0 = vpop.permute.xlu0 %1378  ;;  %1915 = vmatprep.subr.bf16.mxu0 %v1914_v32 }
 0x43c   : > { %v1394_v11 = vsel %vm539_vm6, %v1377_v22, %v1379_v0  ;;  %v1395_v36 = vsel %vm539_vm6, %v1379_v0, %v2544_v56  ;;  %v1383_v35 = vpop.permute.xlu1 %1382  ;;  %1917 = vmatpush1.bf16.msra.mxu0 %v1916_v9  ;;  %v1575_v42 = vld [vmem:[#allocation3 + $0x58] sm:$0xff] }
 0x43d   : > { %1406 = vst [vmem:[#allocation3 + $0x90] sm:$0xf8] %v1394_v11  ;;  %1407 = vst [vmem:[#allocation3 + $0x98] sm:$0xf8] %v1395_v36 }
 0x43f   : > { %v1233_v49 = vpop.permute.xlu0 %1232 }
 0x440   : > { %v1243_v10 = vsel %vm523_vm7, %v1231_v13, %v1233_v49  ;;  %v1297_v27 = vpop.permute.xlu1 %1296 }
 0x441   : > { %v1307_v30 = vsel %vm559_vm15, %v1295_v34, %v1297_v27  ;;  %v1918_v18 = vpack.c.bf16 %v1575_v42, %v1243_v10  ;;  %v1586_v46 = vld [vmem:[#allocation3 + $0xb0] sm:$0xff] }
 0x442   : > { %v1922_v12 = vpack.c.bf16 %v1579_v21, %v1307_v30 }
 0x443   : > { %v1447_v26 = vpop.permute.xlu0 %1446  ;;  %1919 = vmatprep.subr.bf16.mxu0 %v1918_v18 }
 0x444   : > { %v1453_v15 = vpop.permute.xlu1 %1452  ;;  %1921 = vmatpush1.bf16.msra.mxu0 %v1920_v8  ;;  %v1583_v56 = vld [vmem:[#allocation3 + $0x98] sm:$0xff]  ;;  %v1582_v51 = vld [vmem:[#allocation3 + $0x90] sm:$0xff] }
 0x445   : > { %v1462_v17 = vsel %vm503_vm5, %v1453_v15, %v2554_v41  ;;  %1923 = vmatprep.subr.bf16.mxu0 %v1922_v12  ;;  %v1926_v53 = vpack.c.bf16 %v1583_v56, %v2584_v55  ;;  %v1587_v41 = vld [vmem:[#allocation3 + $0xb8] sm:$0xff]  ;;  %v1928_v45 = vpack.c.bf16 %v1582_v51, %v2588_v14 }
 0x446   : > { %1474 = vst [vmem:[#allocation3 + $0xd0] sm:$0x1] %v1462_v17  ;;  %v1591_v14 = vld [vmem:[#allocation3 + $0xd8] sm:$0xff] }
 0x447   : > { %v1499_v37 = vpop.permute.xlu0 %1498 }
 0x448   : > { %v1510_v47 = vsel %vm651_vm12, %v1499_v37, %v2687_v63  ;;  %v1385_v44 = vpop.permute.xlu1 %1384  ;;  %1925 = vmatpush1.bf16.msra.mxu0 %v1924_v38 }
 0x449   : > { %1518 = vst [vmem:[#allocation3 + $0xd0] sm:$0xfe] %v1510_v47  ;;  %v1396_v61 = vsel %vm539_vm6, %v1383_v35, %v1385_v44  ;;  %v1397_v54 = vsel %vm539_vm6, %v1385_v44, %v2546_v50  ;;  %1927 = vmatprep.subr.bf16.mxu0 %v1926_v53 }
 0x44a   : > { %v1930_v31 = vpack.c.bf16 %v1587_v41, %v1397_v54  ;;  %v1932_v57 = vpack.c.bf16 %v1586_v46, %v1396_v61 }
 0x44b   : > { %v1543_v55 = vpop.permute.xlu0 %1542 }
 0x44c   : > { %v1507_v43 = vpop.permute.xlu1 %1506  ;;  %1929 = vmatpush1.bf16.msra.mxu0 %v1928_v45 }
 0x44d   : > { %v1513_v63 = vsel %vm651_vm12, %v1507_v43, %v2002_v39  ;;  %1931 = vmatprep.subr.bf16.mxu0 %v1930_v31 }
 0x44f   : > { %v1449_v25 = vpop.permute.xlu0 %1448 }
 0x450   : > { %v1460_v52 = vsel %vm503_vm5, %v1447_v26, %v1449_v25  ;;  %v1461_v50 = vsel %vm503_vm5, %v1449_v25, %v2551_v3  ;;  %v1545_v1 = vpop.permute.xlu1 %1544  ;;  %1933 = vmatpush1.bf16.msra.mxu0 %v1932_v57  ;;  %v1590_v29 = vld [vmem:[#allocation3 + $0xd0] sm:$0xff] }
 0x451   : > { %v1553_v59 = vsel %vm445_vm4, %v1543_v55, %v1545_v1  ;;  %v1934_v22 = vpack.c.bf16 %v1591_v14, %v1461_v50  ;;  %v1936_v4 = vpack.c.bf16 %v1590_v29, %v1460_v52 }
 0x452   : > { %v1938_v40 = vpack.c.bf16 %v1553_v59, %v1513_v63 }
 0x453   : > { %v1505_v58 = vpop.permute.xlu0 %1504  ;;  %1935 = vmatprep.subr.bf16.mxu0 %v1934_v22 }
 0x454   : > { %v1512_v28 = vsel %vm651_vm12, %v1505_v58, %v1507_v43  ;;  %v1541_v2 = vpop.permute.xlu1 %1540  ;;  %1937 = vmatpush1.bf16.msra.mxu0 %v1936_v4 }
 0x455   : > { %v1552_v16 = vsel %vm445_vm4, %v1541_v2, %v1543_v55  ;;  %1939 = vmatprep.subr.bf16.mxu0 %v1938_v40 }
 0x456   : > { %v1940_v33 = vpack.c.bf16 %v1552_v16, %v1512_v28 }
 0x457   : > { %v1549_v3 = vpop.permute.xlu0 %1548 }
 0x458   : > { %v1551_v19 = vpop.permute.xlu1 %1550  ;;  %1941 = vmatpush1.bf16.msra.mxu0 %v1940_v33 }
 0x459   : > { %v1555_v13 = vsel %vm445_vm4, %v1549_v3, %v1551_v19 }
 0x45a   : > { %1563 = vst [vmem:[#allocation3 + $0x108] sm:$0x7f] %v1555_v13 }
 0x45b   : > { %v1547_v23 = vpop.permute.xlu0 %1546 }
 0x45c   : > { %v1554_v34 = vsel %vm445_vm4, %v1547_v23, %v1549_v3  ;;  %vm1709_vm4 = vcmask 64512  }
 0x45d   : > { %1562 = vst [vmem:[#allocation3 + $0x100] sm:$0x7f] %v1554_v34 }
 0x461   : > { %v1597_v24 = vld [vmem:[#allocation3 + $0x108] sm:$0x7f] }
 0x462   : > { %1876 = vmatprep.subr.msk.mxu0 %vm1148_vm0, %v1597_v24 }
 0x464   : > { %v1596_v62 = vld [vmem:[#allocation3 + $0x100] sm:$0x7f] }
 0x465   : > { %1877 = vmatpush1.msk.msra.mxu0 %vm1148_vm0, %v1596_v62 }
 0x466   : > { %1678 = vmatmul.mubr.f32.vlgmr.msra.gmra.mrb[0].mxu0 %v1091_v7 }
 0x469   : > { %v1601_v48 = vpop.permute.xlu1 %1600 }
 0x46c   : > { %v1707_v38 = vpop.permute.xlu0 %1706 }
 0x539   : > { %v1679_v5 = vpop.f32.mrb[0].mxu0 }
 0x53a   : > { %v1680_v6 = vadd.f32 %v1679_v5, %v1601_v48  ;;  %v1681_v32 = vpop.f32.mrb[1].mxu0 }
 0x53b   : > { %v1682_v9 = vadd.f32 %v1681_v32, %v1601_v48 }
 0x53c   : > { %v1686_v0 = vmul.f32 0.044715, %v1680_v6  ;;  %v1684_v15 = vmul.f32 0.5, %v1680_v6 }
 0x53d   : > { %v1687_v11 = vmul.f32 0.044715, %v1682_v9  ;;  %v1685_v12 = vmul.f32 0.5, %v1682_v9 }
 0x53e   : > { %v1688_v36 = vmul.f32 %v1686_v0, %v1680_v6 }
 0x53f   : > { %v1689_v35 = vmul.f32 %v1687_v11, %v1682_v9 }
 0x540   : > { %v1690_v49 = vmul.f32 %v1688_v36, %v1680_v6 }
 0x541   : > { %v1691_v60 = vmul.f32 %v1689_v35, %v1682_v9 }
 0x542   : > { %v1692_v10 = vadd.f32 %v1690_v49, %v1680_v6 }
 0x543   : > { %v1693_v27 = vadd.f32 %v1691_v60, %v1682_v9 }
 0x544   : > { %v1694_v42 = vmul.f32 0.7978846, %v1692_v10 }
 0x545   : > { %v1695_v30 = vmul.f32 0.7978846, %v1693_v27 }
 0x546   : > { %2012 = vtanh.f32 %v1694_v42 }
 0x547   : > { %2014 = vtanh.f32 %v1695_v30 }
 0x550   : > { %v2013_v18 = vpop.eup %2012 }
 0x551   : > { %v2015_v21 = vpop.eup %2014  ;;  %v1698_v8 = vadd.f32 1.0, %v2013_v18 }
 0x552   : > { %v1699_v26 = vadd.f32 1.0, %v2015_v21 }
 0x553   : > { %v1700_v17 = vmul.f32 %v1698_v8, %v1684_v15 }
 0x554   : > { %v1701_v56 = vmul.f32 %v1699_v26, %v1685_v12 }
 0x556   : > { %1713 = vmatprep.subr.mxu1 %v1701_v56 }
 0x557   : > { %1714 = vmatpush1.msra.mxu1 %v1700_v17 }
 0x558   : > { %1879 = vmatmul.mubr.msk.f32.vlgmr.msra.gmra.mrb[4].mxu1 %vm1709_vm4, %v1702_v20 }
 0x62b   : > { %v1779_v37 = vpop.f32.mrb[4].mxu1 }
 0x62c   : > { %v1780_v53 = vadd.f32 %v1779_v37, %v1707_v38  ;;  %v1781_v51 = vpop.f32.mrb[5].mxu1 }
 0x62d   : > { %v1782_v47 = vadd.f32 %v1781_v51, %v1707_v38 }
 0x62e   : > { %2016 = vtanh.f32 %v1780_v53 }
 0x62f   : > { %2018 = vtanh.f32 %v1782_v47 }
 0x638   : > { %v2017_v44 = vpop.eup %2016 }
 0x639   : > { %v2019_v61 = vpop.eup %2018 }
 0x63a   : > { %v1788_v54 = vcombine.low %v2017_v44, %v2019_v61 }
 0x63c   : > { %1790 = vst [vmem:[%s376_s17] sm:$0x77] %v1788_v54 }
 0x63d PF: > { %s20_s13 = sadd.s32 1, %s2026_s13  }
 0x63e   : > { %p17_p4 = scmp.ge.s32.totalorder %s20_s13, 4  }
 0x640   :  { %19 = sbr.rel (!%p17_p4) target bundleno = 1 (0x1), region = 93 }

</bundles_post_ra>
